<compile_context>
chip_gen: v7x
topology: tpu7x:2x2x1
jax: 0.10.0
libtpu: 0.0.40
codegen_flags: <defaults>
</compile_context>

<pallas_src>
import math
import jax
import jax.numpy as jnp
from jax.experimental import pallas as pl
from jax.experimental.pallas import tpu as pltpu

# ---------------- synthetic BERT config (small) ----------------
VOCAB = 32
HIDDEN = 32
N_LAYERS = 2
N_HEADS = 2
HEAD_DIM = HIDDEN // N_HEADS
INTER = 64
MAX_POS = 16
LN_EPS = 1e-12

BATCH = 2
SEQ = 8

WEIGHTS_PER_LAYER = 12  # wqkv, bqkv, wo, bo, ln1_g, ln1_b, w1, b1, w2, b2, ln2_g, ln2_b


# ---------------- kernel helpers ----------------
def _layernorm(x, gamma, beta):
    # x: (R, H); gamma/beta: (1, H)
    mu = jnp.mean(x, axis=-1, keepdims=True)
    var = jnp.mean((x - mu) * (x - mu), axis=-1, keepdims=True)
    return (x - mu) * jax.lax.rsqrt(var + LN_EPS) * gamma + beta


# ---------------- fused kernel: embedding-LN + all encoder layers ----------------
def fused_bert_kernel(emb_ref, addmask_ref, eg_ref, eb_ref, *refs):
    out_ref = refs[-1]
    wrefs = refs[:-1]                                  # 12 * N_LAYERS weight refs

    # embedding LayerNorm over the whole batch at once: (B*S, H)
    x = _layernorm(emb_ref[...], eg_ref[...], eb_ref[...])
    addmask = addmask_ref[...]                         # (B, S) additive mask (0 / -1e4)
    scale = 1.0 / math.sqrt(HEAD_DIM)

    for li in range(N_LAYERS):
        (wqkv_r, bqkv_r, wo_r, bo_r, ln1_g_r, ln1_b_r,
         w1_r, b1_r, w2_r, b2_r, ln2_g_r, ln2_b_r) = \
            wrefs[li * WEIGHTS_PER_LAYER:(li + 1) * WEIGHTS_PER_LAYER]

        # single fused QKV projection over all B*S rows: (B*S, 3H)
        qkv = jnp.dot(x, wqkv_r[...],
                      preferred_element_type=jnp.float32) + bqkv_r[...]

        # attention: only the (S, S) score/softmax block is per-batch/per-head
        batch_ctx = []
        for b in range(BATCH):
            r0 = b * SEQ
            neg_b = addmask[b:b + 1, :]                # (1, S) broadcast over queries
            head_ctx = []
            for h in range(N_HEADS):
                c0 = h * HEAD_DIM
                qh = qkv[r0:r0 + SEQ, c0:c0 + HEAD_DIM]
                kh = qkv[r0:r0 + SEQ, HIDDEN + c0:HIDDEN + c0 + HEAD_DIM]
                vh = qkv[r0:r0 + SEQ, 2 * HIDDEN + c0:2 * HIDDEN + c0 + HEAD_DIM]
                # scores[i, j] = q_i . k_j  (contract last dims, no transpose op)
                s = jax.lax.dot_general(
                    qh, kh, (((1,), (1,)), ((), ())),
                    preferred_element_type=jnp.float32) * scale      # (S, S)
                s = s + neg_b
                s = s - jnp.max(s, axis=-1, keepdims=True)
                p = jnp.exp(s)
                p = p * pl.reciprocal(jnp.sum(p, axis=-1, keepdims=True),
                                      approx=True)                    # softmax (EUP)
                head_ctx.append(
                    jnp.dot(p, vh, preferred_element_type=jnp.float32))  # (S, dh)
            batch_ctx.append(jnp.concatenate(head_ctx, axis=-1))      # (S, H)
        ctx = jnp.concatenate(batch_ctx, axis=0)                      # (B*S, H)

        attn_out = jnp.dot(ctx, wo_r[...],
                           preferred_element_type=jnp.float32) + bo_r[...]
        x = _layernorm(x + attn_out, ln1_g_r[...], ln1_b_r[...])

        inter = jnp.dot(x, w1_r[...],
                        preferred_element_type=jnp.float32) + b1_r[...]
        # exact (erf-based) GELU, as in pytorch_pretrained_bert
        inter = 0.5 * inter * (1.0 + jax.lax.erf(inter * (1.0 / math.sqrt(2.0))))
        ffn = jnp.dot(inter, w2_r[...],
                      preferred_element_type=jnp.float32) + b2_r[...]
        x = _layernorm(x + ffn, ln2_g_r[...], ln2_b_r[...])

    out_ref[...] = x


# ---------------- parameter construction (deterministic, synthetic) ----------------
def init_params(key):
    def normal(key, shape):
        return (0.02 * jax.random.normal(key, shape)).astype(jnp.float32)

    keys = jax.random.split(key, 4 + N_LAYERS)
    params = {
        "word_emb": normal(keys[0], (VOCAB, HIDDEN)),
        "pos_emb": normal(keys[1], (MAX_POS, HIDDEN)),
        "type_emb": normal(keys[2], (2, HIDDEN)),
        "emb_ln_g": jnp.ones((1, HIDDEN), jnp.float32),
        "emb_ln_b": jnp.zeros((1, HIDDEN), jnp.float32),
        "layers": [],
    }
    for li in range(N_LAYERS):
        lk = jax.random.split(keys[4 + li], 6)
        params["layers"].append({
            "wq": normal(lk[0], (HIDDEN, HIDDEN)),
            "bq": jnp.zeros((1, HIDDEN), jnp.float32),
            "wk": normal(lk[1], (HIDDEN, HIDDEN)),
            "bk": jnp.zeros((1, HIDDEN), jnp.float32),
            "wv": normal(lk[2], (HIDDEN, HIDDEN)),
            "bv": jnp.zeros((1, HIDDEN), jnp.float32),
            "wo": normal(lk[3], (HIDDEN, HIDDEN)),
            "bo": jnp.zeros((1, HIDDEN), jnp.float32),
            "ln1_g": jnp.ones((1, HIDDEN), jnp.float32),
            "ln1_b": jnp.zeros((1, HIDDEN), jnp.float32),
            "w1": normal(lk[4], (HIDDEN, INTER)),
            "b1": jnp.zeros((1, INTER), jnp.float32),
            "w2": normal(lk[5], (INTER, HIDDEN)),
            "b2": jnp.zeros((1, HIDDEN), jnp.float32),
            "ln2_g": jnp.ones((1, HIDDEN), jnp.float32),
            "ln2_b": jnp.zeros((1, HIDDEN), jnp.float32),
        })
    return params


# ---------------- forward: BertCharEmbedding.forward(subwords, bert_mask) ----------------
def bert_char_embedding(subwords, bert_mask, params):
    B, S = subwords.shape
    H = HIDDEN

    # embedding gathers are plain-JAX glue (indexing, no hot compute)
    word = params["word_emb"][subwords]                       # (B, S, H)
    pos = params["pos_emb"][:S][None, :, :]                   # (1, S, H)
    tok = params["type_emb"][0][None, None, :]                # token_type_ids == 0
    emb = (word + pos + tok).astype(jnp.float32).reshape(B * S, H)

    # additive attention mask hoisted out of the kernel: 0 for keep, -1e4 for pad
    addmask = (1.0 - bert_mask.astype(jnp.float32)) * -10000.0   # (B, S)

    # fuse Q/K/V weights (and biases) per layer in the wrapper -> one QKV matmul
    flat_weights = []
    for lp in params["layers"]:
        wqkv = jnp.concatenate([lp["wq"], lp["wk"], lp["wv"]], axis=1)   # (H, 3H)
        bqkv = jnp.concatenate([lp["bq"], lp["bk"], lp["bv"]], axis=1)   # (1, 3H)
        flat_weights += [wqkv, bqkv, lp["wo"], lp["bo"],
                         lp["ln1_g"], lp["ln1_b"],
                         lp["w1"], lp["b1"], lp["w2"], lp["b2"],
                         lp["ln2_g"], lp["ln2_b"]]

    inputs = [emb, addmask, params["emb_ln_g"], params["emb_ln_b"], *flat_weights]
    vmem_spec = pl.BlockSpec(memory_space=pltpu.MemorySpace.VMEM)

    out = pl.pallas_call(
        fused_bert_kernel,
        out_shape=jax.ShapeDtypeStruct((B * S, H), jnp.float32),
        in_specs=[vmem_spec] * len(inputs),
        out_specs=vmem_spec,
    )(*inputs)
    return out.reshape(B, S, H)                               # last encoder layer (B, S, H)


if __name__ == "__main__":
    key = jax.random.PRNGKey(0)
    pkey, ikey = jax.random.split(key)
    params = init_params(pkey)

    subwords = jax.random.randint(ikey, (BATCH, SEQ), 0, VOCAB, dtype=jnp.int32)
    bert_mask = jnp.array([[1, 1, 1, 1, 1, 1, 1, 1],
                           [1, 1, 1, 1, 1, 0, 0, 0]], dtype=jnp.int32)

    out = bert_char_embedding(subwords, bert_mask, params)
    jax.block_until_ready(out)
    assert out.shape == (BATCH, SEQ, HIDDEN) and out.dtype == jnp.float32
    assert bool(jnp.all(jnp.isfinite(out)))
    print("KERNEL_OK")
</pallas_src>

<mosaic_0001>
module attributes {stable_mosaic.version = 11 : i64} {
  func.func @fused_bert_kernel(%arg0: memref<16x32xf32, #tpu.memory_space<vmem>>, %arg1: memref<2x8xf32, #tpu.memory_space<vmem>>, %arg2: memref<1x32xf32, #tpu.memory_space<vmem>>, %arg3: memref<1x32xf32, #tpu.memory_space<vmem>>, %arg4: memref<32x96xf32, #tpu.memory_space<vmem>>, %arg5: memref<1x96xf32, #tpu.memory_space<vmem>>, %arg6: memref<32x32xf32, #tpu.memory_space<vmem>>, %arg7: memref<1x32xf32, #tpu.memory_space<vmem>>, %arg8: memref<1x32xf32, #tpu.memory_space<vmem>>, %arg9: memref<1x32xf32, #tpu.memory_space<vmem>>, %arg10: memref<32x64xf32, #tpu.memory_space<vmem>>, %arg11: memref<1x64xf32, #tpu.memory_space<vmem>>, %arg12: memref<64x32xf32, #tpu.memory_space<vmem>>, %arg13: memref<1x32xf32, #tpu.memory_space<vmem>>, %arg14: memref<1x32xf32, #tpu.memory_space<vmem>>, %arg15: memref<1x32xf32, #tpu.memory_space<vmem>>, %arg16: memref<32x96xf32, #tpu.memory_space<vmem>>, %arg17: memref<1x96xf32, #tpu.memory_space<vmem>>, %arg18: memref<32x32xf32, #tpu.memory_space<vmem>>, %arg19: memref<1x32xf32, #tpu.memory_space<vmem>>, %arg20: memref<1x32xf32, #tpu.memory_space<vmem>>, %arg21: memref<1x32xf32, #tpu.memory_space<vmem>>, %arg22: memref<32x64xf32, #tpu.memory_space<vmem>>, %arg23: memref<1x64xf32, #tpu.memory_space<vmem>>, %arg24: memref<64x32xf32, #tpu.memory_space<vmem>>, %arg25: memref<1x32xf32, #tpu.memory_space<vmem>>, %arg26: memref<1x32xf32, #tpu.memory_space<vmem>>, %arg27: memref<1x32xf32, #tpu.memory_space<vmem>>, %arg28: memref<16x32xf32, #tpu.memory_space<vmem>>) attributes {dimension_semantics = [], scalar_prefetch = 0 : i64, scratch_operands = 0 : i64, tpu.core_type = #tpu.core_type<tc>} {
    %c0 = arith.constant 0 : index
    %c0_0 = arith.constant 0 : index
    %0 = vector.load %arg0[%c0, %c0_0] : memref<16x32xf32, #tpu.memory_space<vmem>>, vector<16x32xf32>
    %c0_1 = arith.constant 0 : index
    %c0_2 = arith.constant 0 : index
    %1 = vector.load %arg2[%c0_1, %c0_2] : memref<1x32xf32, #tpu.memory_space<vmem>>, vector<1x32xf32>
    %c0_3 = arith.constant 0 : index
    %c0_4 = arith.constant 0 : index
    %2 = vector.load %arg3[%c0_3, %c0_4] : memref<1x32xf32, #tpu.memory_space<vmem>>, vector<1x32xf32>
    %cst = arith.constant dense<0.000000e+00> : vector<16xf32>
    %3 = vector.multi_reduction <add>, %0, %cst [1] : vector<16x32xf32> to vector<16xf32>
    %4 = vector.shape_cast %3 : vector<16xf32> to vector<16x1xf32>
    %cst_5 = arith.constant 3.200000e+01 : f32
    %5 = vector.broadcast %cst_5 : f32 to vector<16x1xf32>
    %6 = arith.divf %4, %5 : vector<16x1xf32>
    %7 = vector.broadcast %6 : vector<16x1xf32> to vector<16x32xf32>
    %8 = arith.subf %0, %7 : vector<16x32xf32>
    %9 = vector.broadcast %6 : vector<16x1xf32> to vector<16x32xf32>
    %10 = arith.subf %0, %9 : vector<16x32xf32>
    %11 = arith.mulf %8, %10 : vector<16x32xf32>
    %cst_6 = arith.constant dense<0.000000e+00> : vector<16xf32>
    %12 = vector.multi_reduction <add>, %11, %cst_6 [1] : vector<16x32xf32> to vector<16xf32>
    %13 = vector.shape_cast %12 : vector<16xf32> to vector<16x1xf32>
    %cst_7 = arith.constant 3.200000e+01 : f32
    %14 = vector.broadcast %cst_7 : f32 to vector<16x1xf32>
    %15 = arith.divf %13, %14 : vector<16x1xf32>
    %16 = vector.broadcast %6 : vector<16x1xf32> to vector<16x32xf32>
    %17 = arith.subf %0, %16 : vector<16x32xf32>
    %cst_8 = arith.constant 9.99999996E-13 : f32
    %18 = vector.broadcast %cst_8 : f32 to vector<16x1xf32>
    %19 = arith.addf %15, %18 : vector<16x1xf32>
    %20 = math.rsqrt %19 : vector<16x1xf32>
    %21 = vector.broadcast %20 : vector<16x1xf32> to vector<16x32xf32>
    %22 = arith.mulf %17, %21 : vector<16x32xf32>
    %23 = vector.broadcast %1 : vector<1x32xf32> to vector<16x32xf32>
    %24 = arith.mulf %22, %23 : vector<16x32xf32>
    %25 = vector.broadcast %2 : vector<1x32xf32> to vector<16x32xf32>
    %26 = arith.addf %24, %25 : vector<16x32xf32>
    %c0_9 = arith.constant 0 : index
    %c0_10 = arith.constant 0 : index
    %27 = vector.load %arg1[%c0_9, %c0_10] : memref<2x8xf32, #tpu.memory_space<vmem>>, vector<2x8xf32>
    %c0_11 = arith.constant 0 : index
    %c0_12 = arith.constant 0 : index
    %28 = vector.load %arg4[%c0_11, %c0_12] : memref<32x96xf32, #tpu.memory_space<vmem>>, vector<32x96xf32>
    %cst_13 = arith.constant dense<0.000000e+00> : vector<16x96xf32>
    %29 = tpu.matmul %26, %28, %cst_13 {dimension_numbers = #tpu.dot_dimension_numbers<[1], [0], [0], [1], [0, 0, 1, 1], [], []>} : vector<16x32xf32>, vector<32x96xf32>, vector<16x96xf32> -> vector<16x96xf32>
    %c0_14 = arith.constant 0 : index
    %c0_15 = arith.constant 0 : index
    %30 = vector.load %arg5[%c0_14, %c0_15] : memref<1x96xf32, #tpu.memory_space<vmem>>, vector<1x96xf32>
    %31 = vector.broadcast %30 : vector<1x96xf32> to vector<16x96xf32>
    %32 = arith.addf %29, %31 : vector<16x96xf32>
    %33 = vector.extract_strided_slice %27 {offsets = [0, 0], sizes = [1, 8], strides = [1, 1]} : vector<2x8xf32> to vector<1x8xf32>
    %34 = vector.extract_strided_slice %32 {offsets = [0, 0], sizes = [8, 16], strides = [1, 1]} : vector<16x96xf32> to vector<8x16xf32>
    %35 = vector.extract_strided_slice %32 {offsets = [0, 32], sizes = [8, 16], strides = [1, 1]} : vector<16x96xf32> to vector<8x16xf32>
    %36 = vector.extract_strided_slice %32 {offsets = [0, 64], sizes = [8, 16], strides = [1, 1]} : vector<16x96xf32> to vector<8x16xf32>
    %cst_16 = arith.constant dense<0.000000e+00> : vector<8x8xf32>
    %37 = tpu.matmul %34, %35, %cst_16 {dimension_numbers = #tpu.dot_dimension_numbers<[1], [1], [0], [0], [0, 0, 1, 0], [], []>} : vector<8x16xf32>, vector<8x16xf32>, vector<8x8xf32> -> vector<8x8xf32>
    %cst_17 = arith.constant 2.500000e-01 : f32
    %38 = vector.broadcast %cst_17 : f32 to vector<8x8xf32>
    %39 = arith.mulf %37, %38 : vector<8x8xf32>
    %40 = vector.broadcast %33 : vector<1x8xf32> to vector<8x8xf32>
    %41 = arith.addf %39, %40 : vector<8x8xf32>
    %cst_18 = arith.constant dense<0xFF800000> : vector<8xf32>
    %42 = vector.multi_reduction <maximumf>, %41, %cst_18 [1] : vector<8x8xf32> to vector<8xf32>
    %43 = vector.shape_cast %42 : vector<8xf32> to vector<8x1xf32>
    %44 = vector.broadcast %43 : vector<8x1xf32> to vector<8x8xf32>
    %45 = arith.subf %41, %44 : vector<8x8xf32>
    %46 = math.exp %45 : vector<8x8xf32>
    %cst_19 = arith.constant dense<0.000000e+00> : vector<8xf32>
    %47 = vector.multi_reduction <add>, %46, %cst_19 [1] : vector<8x8xf32> to vector<8xf32>
    %48 = vector.shape_cast %47 : vector<8xf32> to vector<8x1xf32>
    %49 = tpu.reciprocal %48 {approx = true} : vector<8x1xf32> -> vector<8x1xf32>
    %50 = vector.broadcast %49 : vector<8x1xf32> to vector<8x8xf32>
    %51 = arith.mulf %46, %50 : vector<8x8xf32>
    %cst_20 = arith.constant dense<0.000000e+00> : vector<8x16xf32>
    %52 = tpu.matmul %51, %36, %cst_20 {dimension_numbers = #tpu.dot_dimension_numbers<[1], [0], [0], [1], [0, 0, 1, 1], [], []>} : vector<8x8xf32>, vector<8x16xf32>, vector<8x16xf32> -> vector<8x16xf32>
    %53 = vector.extract_strided_slice %32 {offsets = [0, 16], sizes = [8, 16], strides = [1, 1]} : vector<16x96xf32> to vector<8x16xf32>
    %54 = vector.extract_strided_slice %32 {offsets = [0, 48], sizes = [8, 16], strides = [1, 1]} : vector<16x96xf32> to vector<8x16xf32>
    %55 = vector.extract_strided_slice %32 {offsets = [0, 80], sizes = [8, 16], strides = [1, 1]} : vector<16x96xf32> to vector<8x16xf32>
    %cst_21 = arith.constant dense<0.000000e+00> : vector<8x8xf32>
    %56 = tpu.matmul %53, %54, %cst_21 {dimension_numbers = #tpu.dot_dimension_numbers<[1], [1], [0], [0], [0, 0, 1, 0], [], []>} : vector<8x16xf32>, vector<8x16xf32>, vector<8x8xf32> -> vector<8x8xf32>
    %cst_22 = arith.constant 2.500000e-01 : f32
    %57 = vector.broadcast %cst_22 : f32 to vector<8x8xf32>
    %58 = arith.mulf %56, %57 : vector<8x8xf32>
    %59 = vector.broadcast %33 : vector<1x8xf32> to vector<8x8xf32>
    %60 = arith.addf %58, %59 : vector<8x8xf32>
    %cst_23 = arith.constant dense<0xFF800000> : vector<8xf32>
    %61 = vector.multi_reduction <maximumf>, %60, %cst_23 [1] : vector<8x8xf32> to vector<8xf32>
    %62 = vector.shape_cast %61 : vector<8xf32> to vector<8x1xf32>
    %63 = vector.broadcast %62 : vector<8x1xf32> to vector<8x8xf32>
    %64 = arith.subf %60, %63 : vector<8x8xf32>
    %65 = math.exp %64 : vector<8x8xf32>
    %cst_24 = arith.constant dense<0.000000e+00> : vector<8xf32>
    %66 = vector.multi_reduction <add>, %65, %cst_24 [1] : vector<8x8xf32> to vector<8xf32>
    %67 = vector.shape_cast %66 : vector<8xf32> to vector<8x1xf32>
    %68 = tpu.reciprocal %67 {approx = true} : vector<8x1xf32> -> vector<8x1xf32>
    %69 = vector.broadcast %68 : vector<8x1xf32> to vector<8x8xf32>
    %70 = arith.mulf %65, %69 : vector<8x8xf32>
    %cst_25 = arith.constant dense<0.000000e+00> : vector<8x16xf32>
    %71 = tpu.matmul %70, %55, %cst_25 {dimension_numbers = #tpu.dot_dimension_numbers<[1], [0], [0], [1], [0, 0, 1, 1], [], []>} : vector<8x8xf32>, vector<8x16xf32>, vector<8x16xf32> -> vector<8x16xf32>
    %72 = tpu.concatenate %52, %71 in 1 : vector<8x16xf32>, vector<8x16xf32> -> vector<8x32xf32>
    %73 = vector.extract_strided_slice %27 {offsets = [1, 0], sizes = [1, 8], strides = [1, 1]} : vector<2x8xf32> to vector<1x8xf32>
    %74 = vector.extract_strided_slice %32 {offsets = [8, 0], sizes = [8, 16], strides = [1, 1]} : vector<16x96xf32> to vector<8x16xf32>
    %75 = vector.extract_strided_slice %32 {offsets = [8, 32], sizes = [8, 16], strides = [1, 1]} : vector<16x96xf32> to vector<8x16xf32>
    %76 = vector.extract_strided_slice %32 {offsets = [8, 64], sizes = [8, 16], strides = [1, 1]} : vector<16x96xf32> to vector<8x16xf32>
    %cst_26 = arith.constant dense<0.000000e+00> : vector<8x8xf32>
    %77 = tpu.matmul %74, %75, %cst_26 {dimension_numbers = #tpu.dot_dimension_numbers<[1], [1], [0], [0], [0, 0, 1, 0], [], []>} : vector<8x16xf32>, vector<8x16xf32>, vector<8x8xf32> -> vector<8x8xf32>
    %cst_27 = arith.constant 2.500000e-01 : f32
    %78 = vector.broadcast %cst_27 : f32 to vector<8x8xf32>
    %79 = arith.mulf %77, %78 : vector<8x8xf32>
    %80 = vector.broadcast %73 : vector<1x8xf32> to vector<8x8xf32>
    %81 = arith.addf %79, %80 : vector<8x8xf32>
    %cst_28 = arith.constant dense<0xFF800000> : vector<8xf32>
    %82 = vector.multi_reduction <maximumf>, %81, %cst_28 [1] : vector<8x8xf32> to vector<8xf32>
    %83 = vector.shape_cast %82 : vector<8xf32> to vector<8x1xf32>
    %84 = vector.broadcast %83 : vector<8x1xf32> to vector<8x8xf32>
    %85 = arith.subf %81, %84 : vector<8x8xf32>
    %86 = math.exp %85 : vector<8x8xf32>
    %cst_29 = arith.constant dense<0.000000e+00> : vector<8xf32>
    %87 = vector.multi_reduction <add>, %86, %cst_29 [1] : vector<8x8xf32> to vector<8xf32>
    %88 = vector.shape_cast %87 : vector<8xf32> to vector<8x1xf32>
    %89 = tpu.reciprocal %88 {approx = true} : vector<8x1xf32> -> vector<8x1xf32>
    %90 = vector.broadcast %89 : vector<8x1xf32> to vector<8x8xf32>
    %91 = arith.mulf %86, %90 : vector<8x8xf32>
    %cst_30 = arith.constant dense<0.000000e+00> : vector<8x16xf32>
    %92 = tpu.matmul %91, %76, %cst_30 {dimension_numbers = #tpu.dot_dimension_numbers<[1], [0], [0], [1], [0, 0, 1, 1], [], []>} : vector<8x8xf32>, vector<8x16xf32>, vector<8x16xf32> -> vector<8x16xf32>
    %93 = vector.extract_strided_slice %32 {offsets = [8, 16], sizes = [8, 16], strides = [1, 1]} : vector<16x96xf32> to vector<8x16xf32>
    %94 = vector.extract_strided_slice %32 {offsets = [8, 48], sizes = [8, 16], strides = [1, 1]} : vector<16x96xf32> to vector<8x16xf32>
    %95 = vector.extract_strided_slice %32 {offsets = [8, 80], sizes = [8, 16], strides = [1, 1]} : vector<16x96xf32> to vector<8x16xf32>
    %cst_31 = arith.constant dense<0.000000e+00> : vector<8x8xf32>
    %96 = tpu.matmul %93, %94, %cst_31 {dimension_numbers = #tpu.dot_dimension_numbers<[1], [1], [0], [0], [0, 0, 1, 0], [], []>} : vector<8x16xf32>, vector<8x16xf32>, vector<8x8xf32> -> vector<8x8xf32>
    %cst_32 = arith.constant 2.500000e-01 : f32
    %97 = vector.broadcast %cst_32 : f32 to vector<8x8xf32>
    %98 = arith.mulf %96, %97 : vector<8x8xf32>
    %99 = vector.broadcast %73 : vector<1x8xf32> to vector<8x8xf32>
    %100 = arith.addf %98, %99 : vector<8x8xf32>
    %cst_33 = arith.constant dense<0xFF800000> : vector<8xf32>
    %101 = vector.multi_reduction <maximumf>, %100, %cst_33 [1] : vector<8x8xf32> to vector<8xf32>
    %102 = vector.shape_cast %101 : vector<8xf32> to vector<8x1xf32>
    %103 = vector.broadcast %102 : vector<8x1xf32> to vector<8x8xf32>
    %104 = arith.subf %100, %103 : vector<8x8xf32>
    %105 = math.exp %104 : vector<8x8xf32>
    %cst_34 = arith.constant dense<0.000000e+00> : vector<8xf32>
    %106 = vector.multi_reduction <add>, %105, %cst_34 [1] : vector<8x8xf32> to vector<8xf32>
    %107 = vector.shape_cast %106 : vector<8xf32> to vector<8x1xf32>
    %108 = tpu.reciprocal %107 {approx = true} : vector<8x1xf32> -> vector<8x1xf32>
    %109 = vector.broadcast %108 : vector<8x1xf32> to vector<8x8xf32>
    %110 = arith.mulf %105, %109 : vector<8x8xf32>
    %cst_35 = arith.constant dense<0.000000e+00> : vector<8x16xf32>
    %111 = tpu.matmul %110, %95, %cst_35 {dimension_numbers = #tpu.dot_dimension_numbers<[1], [0], [0], [1], [0, 0, 1, 1], [], []>} : vector<8x8xf32>, vector<8x16xf32>, vector<8x16xf32> -> vector<8x16xf32>
    %112 = tpu.concatenate %92, %111 in 1 : vector<8x16xf32>, vector<8x16xf32> -> vector<8x32xf32>
    %113 = tpu.concatenate %72, %112 in 0 : vector<8x32xf32>, vector<8x32xf32> -> vector<16x32xf32>
    %c0_36 = arith.constant 0 : index
    %c0_37 = arith.constant 0 : index
    %114 = vector.load %arg6[%c0_36, %c0_37] : memref<32x32xf32, #tpu.memory_space<vmem>>, vector<32x32xf32>
    %cst_38 = arith.constant dense<0.000000e+00> : vector<16x32xf32>
    %115 = tpu.matmul %113, %114, %cst_38 {dimension_numbers = #tpu.dot_dimension_numbers<[1], [0], [0], [1], [0, 0, 1, 1], [], []>} : vector<16x32xf32>, vector<32x32xf32>, vector<16x32xf32> -> vector<16x32xf32>
    %c0_39 = arith.constant 0 : index
    %c0_40 = arith.constant 0 : index
    %116 = vector.load %arg7[%c0_39, %c0_40] : memref<1x32xf32, #tpu.memory_space<vmem>>, vector<1x32xf32>
    %117 = vector.broadcast %116 : vector<1x32xf32> to vector<16x32xf32>
    %118 = arith.addf %115, %117 : vector<16x32xf32>
    %119 = arith.addf %26, %118 : vector<16x32xf32>
    %c0_41 = arith.constant 0 : index
    %c0_42 = arith.constant 0 : index
    %120 = vector.load %arg8[%c0_41, %c0_42] : memref<1x32xf32, #tpu.memory_space<vmem>>, vector<1x32xf32>
    %c0_43 = arith.constant 0 : index
    %c0_44 = arith.constant 0 : index
    %121 = vector.load %arg9[%c0_43, %c0_44] : memref<1x32xf32, #tpu.memory_space<vmem>>, vector<1x32xf32>
    %cst_45 = arith.constant dense<0.000000e+00> : vector<16xf32>
    %122 = vector.multi_reduction <add>, %119, %cst_45 [1] : vector<16x32xf32> to vector<16xf32>
    %123 = vector.shape_cast %122 : vector<16xf32> to vector<16x1xf32>
    %cst_46 = arith.constant 3.200000e+01 : f32
    %124 = vector.broadcast %cst_46 : f32 to vector<16x1xf32>
    %125 = arith.divf %123, %124 : vector<16x1xf32>
    %126 = vector.broadcast %125 : vector<16x1xf32> to vector<16x32xf32>
    %127 = arith.subf %119, %126 : vector<16x32xf32>
    %128 = vector.broadcast %125 : vector<16x1xf32> to vector<16x32xf32>
    %129 = arith.subf %119, %128 : vector<16x32xf32>
    %130 = arith.mulf %127, %129 : vector<16x32xf32>
    %cst_47 = arith.constant dense<0.000000e+00> : vector<16xf32>
    %131 = vector.multi_reduction <add>, %130, %cst_47 [1] : vector<16x32xf32> to vector<16xf32>
    %132 = vector.shape_cast %131 : vector<16xf32> to vector<16x1xf32>
    %cst_48 = arith.constant 3.200000e+01 : f32
    %133 = vector.broadcast %cst_48 : f32 to vector<16x1xf32>
    %134 = arith.divf %132, %133 : vector<16x1xf32>
    %135 = vector.broadcast %125 : vector<16x1xf32> to vector<16x32xf32>
    %136 = arith.subf %119, %135 : vector<16x32xf32>
    %cst_49 = arith.constant 9.99999996E-13 : f32
    %137 = vector.broadcast %cst_49 : f32 to vector<16x1xf32>
    %138 = arith.addf %134, %137 : vector<16x1xf32>
    %139 = math.rsqrt %138 : vector<16x1xf32>
    %140 = vector.broadcast %139 : vector<16x1xf32> to vector<16x32xf32>
    %141 = arith.mulf %136, %140 : vector<16x32xf32>
    %142 = vector.broadcast %120 : vector<1x32xf32> to vector<16x32xf32>
    %143 = arith.mulf %141, %142 : vector<16x32xf32>
    %144 = vector.broadcast %121 : vector<1x32xf32> to vector<16x32xf32>
    %145 = arith.addf %143, %144 : vector<16x32xf32>
    %c0_50 = arith.constant 0 : index
    %c0_51 = arith.constant 0 : index
    %146 = vector.load %arg10[%c0_50, %c0_51] : memref<32x64xf32, #tpu.memory_space<vmem>>, vector<32x64xf32>
    %cst_52 = arith.constant dense<0.000000e+00> : vector<16x64xf32>
    %147 = tpu.matmul %145, %146, %cst_52 {dimension_numbers = #tpu.dot_dimension_numbers<[1], [0], [0], [1], [0, 0, 1, 1], [], []>} : vector<16x32xf32>, vector<32x64xf32>, vector<16x64xf32> -> vector<16x64xf32>
    %c0_53 = arith.constant 0 : index
    %c0_54 = arith.constant 0 : index
    %148 = vector.load %arg11[%c0_53, %c0_54] : memref<1x64xf32, #tpu.memory_space<vmem>>, vector<1x64xf32>
    %149 = vector.broadcast %148 : vector<1x64xf32> to vector<16x64xf32>
    %150 = arith.addf %147, %149 : vector<16x64xf32>
    %cst_55 = arith.constant 5.000000e-01 : f32
    %151 = vector.broadcast %cst_55 : f32 to vector<16x64xf32>
    %152 = arith.mulf %151, %150 : vector<16x64xf32>
    %cst_56 = arith.constant 0.707106769 : f32
    %153 = vector.broadcast %cst_56 : f32 to vector<16x64xf32>
    %154 = arith.mulf %150, %153 : vector<16x64xf32>
    %155 = math.erf %154 : vector<16x64xf32>
    %cst_57 = arith.constant 1.000000e+00 : f32
    %156 = vector.broadcast %cst_57 : f32 to vector<16x64xf32>
    %157 = arith.addf %156, %155 : vector<16x64xf32>
    %158 = arith.mulf %152, %157 : vector<16x64xf32>
    %c0_58 = arith.constant 0 : index
    %c0_59 = arith.constant 0 : index
    %159 = vector.load %arg12[%c0_58, %c0_59] : memref<64x32xf32, #tpu.memory_space<vmem>>, vector<64x32xf32>
    %cst_60 = arith.constant dense<0.000000e+00> : vector<16x32xf32>
    %160 = tpu.matmul %158, %159, %cst_60 {dimension_numbers = #tpu.dot_dimension_numbers<[1], [0], [0], [1], [0, 0, 1, 1], [], []>} : vector<16x64xf32>, vector<64x32xf32>, vector<16x32xf32> -> vector<16x32xf32>
    %c0_61 = arith.constant 0 : index
    %c0_62 = arith.constant 0 : index
    %161 = vector.load %arg13[%c0_61, %c0_62] : memref<1x32xf32, #tpu.memory_space<vmem>>, vector<1x32xf32>
    %162 = vector.broadcast %161 : vector<1x32xf32> to vector<16x32xf32>
    %163 = arith.addf %160, %162 : vector<16x32xf32>
    %164 = arith.addf %145, %163 : vector<16x32xf32>
    %c0_63 = arith.constant 0 : index
    %c0_64 = arith.constant 0 : index
    %165 = vector.load %arg14[%c0_63, %c0_64] : memref<1x32xf32, #tpu.memory_space<vmem>>, vector<1x32xf32>
    %c0_65 = arith.constant 0 : index
    %c0_66 = arith.constant 0 : index
    %166 = vector.load %arg15[%c0_65, %c0_66] : memref<1x32xf32, #tpu.memory_space<vmem>>, vector<1x32xf32>
    %cst_67 = arith.constant dense<0.000000e+00> : vector<16xf32>
    %167 = vector.multi_reduction <add>, %164, %cst_67 [1] : vector<16x32xf32> to vector<16xf32>
    %168 = vector.shape_cast %167 : vector<16xf32> to vector<16x1xf32>
    %cst_68 = arith.constant 3.200000e+01 : f32
    %169 = vector.broadcast %cst_68 : f32 to vector<16x1xf32>
    %170 = arith.divf %168, %169 : vector<16x1xf32>
    %171 = vector.broadcast %170 : vector<16x1xf32> to vector<16x32xf32>
    %172 = arith.subf %164, %171 : vector<16x32xf32>
    %173 = vector.broadcast %170 : vector<16x1xf32> to vector<16x32xf32>
    %174 = arith.subf %164, %173 : vector<16x32xf32>
    %175 = arith.mulf %172, %174 : vector<16x32xf32>
    %cst_69 = arith.constant dense<0.000000e+00> : vector<16xf32>
    %176 = vector.multi_reduction <add>, %175, %cst_69 [1] : vector<16x32xf32> to vector<16xf32>
    %177 = vector.shape_cast %176 : vector<16xf32> to vector<16x1xf32>
    %cst_70 = arith.constant 3.200000e+01 : f32
    %178 = vector.broadcast %cst_70 : f32 to vector<16x1xf32>
    %179 = arith.divf %177, %178 : vector<16x1xf32>
    %180 = vector.broadcast %170 : vector<16x1xf32> to vector<16x32xf32>
    %181 = arith.subf %164, %180 : vector<16x32xf32>
    %cst_71 = arith.constant 9.99999996E-13 : f32
    %182 = vector.broadcast %cst_71 : f32 to vector<16x1xf32>
    %183 = arith.addf %179, %182 : vector<16x1xf32>
    %184 = math.rsqrt %183 : vector<16x1xf32>
    %185 = vector.broadcast %184 : vector<16x1xf32> to vector<16x32xf32>
    %186 = arith.mulf %181, %185 : vector<16x32xf32>
    %187 = vector.broadcast %165 : vector<1x32xf32> to vector<16x32xf32>
    %188 = arith.mulf %186, %187 : vector<16x32xf32>
    %189 = vector.broadcast %166 : vector<1x32xf32> to vector<16x32xf32>
    %190 = arith.addf %188, %189 : vector<16x32xf32>
    %c0_72 = arith.constant 0 : index
    %c0_73 = arith.constant 0 : index
    %191 = vector.load %arg16[%c0_72, %c0_73] : memref<32x96xf32, #tpu.memory_space<vmem>>, vector<32x96xf32>
    %cst_74 = arith.constant dense<0.000000e+00> : vector<16x96xf32>
    %192 = tpu.matmul %190, %191, %cst_74 {dimension_numbers = #tpu.dot_dimension_numbers<[1], [0], [0], [1], [0, 0, 1, 1], [], []>} : vector<16x32xf32>, vector<32x96xf32>, vector<16x96xf32> -> vector<16x96xf32>
    %c0_75 = arith.constant 0 : index
    %c0_76 = arith.constant 0 : index
    %193 = vector.load %arg17[%c0_75, %c0_76] : memref<1x96xf32, #tpu.memory_space<vmem>>, vector<1x96xf32>
    %194 = vector.broadcast %193 : vector<1x96xf32> to vector<16x96xf32>
    %195 = arith.addf %192, %194 : vector<16x96xf32>
    %196 = vector.extract_strided_slice %27 {offsets = [0, 0], sizes = [1, 8], strides = [1, 1]} : vector<2x8xf32> to vector<1x8xf32>
    %197 = vector.extract_strided_slice %195 {offsets = [0, 0], sizes = [8, 16], strides = [1, 1]} : vector<16x96xf32> to vector<8x16xf32>
    %198 = vector.extract_strided_slice %195 {offsets = [0, 32], sizes = [8, 16], strides = [1, 1]} : vector<16x96xf32> to vector<8x16xf32>
    %199 = vector.extract_strided_slice %195 {offsets = [0, 64], sizes = [8, 16], strides = [1, 1]} : vector<16x96xf32> to vector<8x16xf32>
    %cst_77 = arith.constant dense<0.000000e+00> : vector<8x8xf32>
    %200 = tpu.matmul %197, %198, %cst_77 {dimension_numbers = #tpu.dot_dimension_numbers<[1], [1], [0], [0], [0, 0, 1, 0], [], []>} : vector<8x16xf32>, vector<8x16xf32>, vector<8x8xf32> -> vector<8x8xf32>
    %cst_78 = arith.constant 2.500000e-01 : f32
    %201 = vector.broadcast %cst_78 : f32 to vector<8x8xf32>
    %202 = arith.mulf %200, %201 : vector<8x8xf32>
    %203 = vector.broadcast %196 : vector<1x8xf32> to vector<8x8xf32>
    %204 = arith.addf %202, %203 : vector<8x8xf32>
    %cst_79 = arith.constant dense<0xFF800000> : vector<8xf32>
    %205 = vector.multi_reduction <maximumf>, %204, %cst_79 [1] : vector<8x8xf32> to vector<8xf32>
    %206 = vector.shape_cast %205 : vector<8xf32> to vector<8x1xf32>
    %207 = vector.broadcast %206 : vector<8x1xf32> to vector<8x8xf32>
    %208 = arith.subf %204, %207 : vector<8x8xf32>
    %209 = math.exp %208 : vector<8x8xf32>
    %cst_80 = arith.constant dense<0.000000e+00> : vector<8xf32>
    %210 = vector.multi_reduction <add>, %209, %cst_80 [1] : vector<8x8xf32> to vector<8xf32>
    %211 = vector.shape_cast %210 : vector<8xf32> to vector<8x1xf32>
    %212 = tpu.reciprocal %211 {approx = true} : vector<8x1xf32> -> vector<8x1xf32>
    %213 = vector.broadcast %212 : vector<8x1xf32> to vector<8x8xf32>
    %214 = arith.mulf %209, %213 : vector<8x8xf32>
    %cst_81 = arith.constant dense<0.000000e+00> : vector<8x16xf32>
    %215 = tpu.matmul %214, %199, %cst_81 {dimension_numbers = #tpu.dot_dimension_numbers<[1], [0], [0], [1], [0, 0, 1, 1], [], []>} : vector<8x8xf32>, vector<8x16xf32>, vector<8x16xf32> -> vector<8x16xf32>
    %216 = vector.extract_strided_slice %195 {offsets = [0, 16], sizes = [8, 16], strides = [1, 1]} : vector<16x96xf32> to vector<8x16xf32>
    %217 = vector.extract_strided_slice %195 {offsets = [0, 48], sizes = [8, 16], strides = [1, 1]} : vector<16x96xf32> to vector<8x16xf32>
    %218 = vector.extract_strided_slice %195 {offsets = [0, 80], sizes = [8, 16], strides = [1, 1]} : vector<16x96xf32> to vector<8x16xf32>
    %cst_82 = arith.constant dense<0.000000e+00> : vector<8x8xf32>
    %219 = tpu.matmul %216, %217, %cst_82 {dimension_numbers = #tpu.dot_dimension_numbers<[1], [1], [0], [0], [0, 0, 1, 0], [], []>} : vector<8x16xf32>, vector<8x16xf32>, vector<8x8xf32> -> vector<8x8xf32>
    %cst_83 = arith.constant 2.500000e-01 : f32
    %220 = vector.broadcast %cst_83 : f32 to vector<8x8xf32>
    %221 = arith.mulf %219, %220 : vector<8x8xf32>
    %222 = vector.broadcast %196 : vector<1x8xf32> to vector<8x8xf32>
    %223 = arith.addf %221, %222 : vector<8x8xf32>
    %cst_84 = arith.constant dense<0xFF800000> : vector<8xf32>
    %224 = vector.multi_reduction <maximumf>, %223, %cst_84 [1] : vector<8x8xf32> to vector<8xf32>
    %225 = vector.shape_cast %224 : vector<8xf32> to vector<8x1xf32>
    %226 = vector.broadcast %225 : vector<8x1xf32> to vector<8x8xf32>
    %227 = arith.subf %223, %226 : vector<8x8xf32>
    %228 = math.exp %227 : vector<8x8xf32>
    %cst_85 = arith.constant dense<0.000000e+00> : vector<8xf32>
    %229 = vector.multi_reduction <add>, %228, %cst_85 [1] : vector<8x8xf32> to vector<8xf32>
    %230 = vector.shape_cast %229 : vector<8xf32> to vector<8x1xf32>
    %231 = tpu.reciprocal %230 {approx = true} : vector<8x1xf32> -> vector<8x1xf32>
    %232 = vector.broadcast %231 : vector<8x1xf32> to vector<8x8xf32>
    %233 = arith.mulf %228, %232 : vector<8x8xf32>
    %cst_86 = arith.constant dense<0.000000e+00> : vector<8x16xf32>
    %234 = tpu.matmul %233, %218, %cst_86 {dimension_numbers = #tpu.dot_dimension_numbers<[1], [0], [0], [1], [0, 0, 1, 1], [], []>} : vector<8x8xf32>, vector<8x16xf32>, vector<8x16xf32> -> vector<8x16xf32>
    %235 = tpu.concatenate %215, %234 in 1 : vector<8x16xf32>, vector<8x16xf32> -> vector<8x32xf32>
    %236 = vector.extract_strided_slice %27 {offsets = [1, 0], sizes = [1, 8], strides = [1, 1]} : vector<2x8xf32> to vector<1x8xf32>
    %237 = vector.extract_strided_slice %195 {offsets = [8, 0], sizes = [8, 16], strides = [1, 1]} : vector<16x96xf32> to vector<8x16xf32>
    %238 = vector.extract_strided_slice %195 {offsets = [8, 32], sizes = [8, 16], strides = [1, 1]} : vector<16x96xf32> to vector<8x16xf32>
    %239 = vector.extract_strided_slice %195 {offsets = [8, 64], sizes = [8, 16], strides = [1, 1]} : vector<16x96xf32> to vector<8x16xf32>
    %cst_87 = arith.constant dense<0.000000e+00> : vector<8x8xf32>
    %240 = tpu.matmul %237, %238, %cst_87 {dimension_numbers = #tpu.dot_dimension_numbers<[1], [1], [0], [0], [0, 0, 1, 0], [], []>} : vector<8x16xf32>, vector<8x16xf32>, vector<8x8xf32> -> vector<8x8xf32>
    %cst_88 = arith.constant 2.500000e-01 : f32
    %241 = vector.broadcast %cst_88 : f32 to vector<8x8xf32>
    %242 = arith.mulf %240, %241 : vector<8x8xf32>
    %243 = vector.broadcast %236 : vector<1x8xf32> to vector<8x8xf32>
    %244 = arith.addf %242, %243 : vector<8x8xf32>
    %cst_89 = arith.constant dense<0xFF800000> : vector<8xf32>
    %245 = vector.multi_reduction <maximumf>, %244, %cst_89 [1] : vector<8x8xf32> to vector<8xf32>
    %246 = vector.shape_cast %245 : vector<8xf32> to vector<8x1xf32>
    %247 = vector.broadcast %246 : vector<8x1xf32> to vector<8x8xf32>
    %248 = arith.subf %244, %247 : vector<8x8xf32>
    %249 = math.exp %248 : vector<8x8xf32>
    %cst_90 = arith.constant dense<0.000000e+00> : vector<8xf32>
    %250 = vector.multi_reduction <add>, %249, %cst_90 [1] : vector<8x8xf32> to vector<8xf32>
    %251 = vector.shape_cast %250 : vector<8xf32> to vector<8x1xf32>
    %252 = tpu.reciprocal %251 {approx = true} : vector<8x1xf32> -> vector<8x1xf32>
    %253 = vector.broadcast %252 : vector<8x1xf32> to vector<8x8xf32>
    %254 = arith.mulf %249, %253 : vector<8x8xf32>
    %cst_91 = arith.constant dense<0.000000e+00> : vector<8x16xf32>
    %255 = tpu.matmul %254, %239, %cst_91 {dimension_numbers = #tpu.dot_dimension_numbers<[1], [0], [0], [1], [0, 0, 1, 1], [], []>} : vector<8x8xf32>, vector<8x16xf32>, vector<8x16xf32> -> vector<8x16xf32>
    %256 = vector.extract_strided_slice %195 {offsets = [8, 16], sizes = [8, 16], strides = [1, 1]} : vector<16x96xf32> to vector<8x16xf32>
    %257 = vector.extract_strided_slice %195 {offsets = [8, 48], sizes = [8, 16], strides = [1, 1]} : vector<16x96xf32> to vector<8x16xf32>
    %258 = vector.extract_strided_slice %195 {offsets = [8, 80], sizes = [8, 16], strides = [1, 1]} : vector<16x96xf32> to vector<8x16xf32>
    %cst_92 = arith.constant dense<0.000000e+00> : vector<8x8xf32>
    %259 = tpu.matmul %256, %257, %cst_92 {dimension_numbers = #tpu.dot_dimension_numbers<[1], [1], [0], [0], [0, 0, 1, 0], [], []>} : vector<8x16xf32>, vector<8x16xf32>, vector<8x8xf32> -> vector<8x8xf32>
    %cst_93 = arith.constant 2.500000e-01 : f32
    %260 = vector.broadcast %cst_93 : f32 to vector<8x8xf32>
    %261 = arith.mulf %259, %260 : vector<8x8xf32>
    %262 = vector.broadcast %236 : vector<1x8xf32> to vector<8x8xf32>
    %263 = arith.addf %261, %262 : vector<8x8xf32>
    %cst_94 = arith.constant dense<0xFF800000> : vector<8xf32>
    %264 = vector.multi_reduction <maximumf>, %263, %cst_94 [1] : vector<8x8xf32> to vector<8xf32>
    %265 = vector.shape_cast %264 : vector<8xf32> to vector<8x1xf32>
    %266 = vector.broadcast %265 : vector<8x1xf32> to vector<8x8xf32>
    %267 = arith.subf %263, %266 : vector<8x8xf32>
    %268 = math.exp %267 : vector<8x8xf32>
    %cst_95 = arith.constant dense<0.000000e+00> : vector<8xf32>
    %269 = vector.multi_reduction <add>, %268, %cst_95 [1] : vector<8x8xf32> to vector<8xf32>
    %270 = vector.shape_cast %269 : vector<8xf32> to vector<8x1xf32>
    %271 = tpu.reciprocal %270 {approx = true} : vector<8x1xf32> -> vector<8x1xf32>
    %272 = vector.broadcast %271 : vector<8x1xf32> to vector<8x8xf32>
    %273 = arith.mulf %268, %272 : vector<8x8xf32>
    %cst_96 = arith.constant dense<0.000000e+00> : vector<8x16xf32>
    %274 = tpu.matmul %273, %258, %cst_96 {dimension_numbers = #tpu.dot_dimension_numbers<[1], [0], [0], [1], [0, 0, 1, 1], [], []>} : vector<8x8xf32>, vector<8x16xf32>, vector<8x16xf32> -> vector<8x16xf32>
    %275 = tpu.concatenate %255, %274 in 1 : vector<8x16xf32>, vector<8x16xf32> -> vector<8x32xf32>
    %276 = tpu.concatenate %235, %275 in 0 : vector<8x32xf32>, vector<8x32xf32> -> vector<16x32xf32>
    %c0_97 = arith.constant 0 : index
    %c0_98 = arith.constant 0 : index
    %277 = vector.load %arg18[%c0_97, %c0_98] : memref<32x32xf32, #tpu.memory_space<vmem>>, vector<32x32xf32>
    %cst_99 = arith.constant dense<0.000000e+00> : vector<16x32xf32>
    %278 = tpu.matmul %276, %277, %cst_99 {dimension_numbers = #tpu.dot_dimension_numbers<[1], [0], [0], [1], [0, 0, 1, 1], [], []>} : vector<16x32xf32>, vector<32x32xf32>, vector<16x32xf32> -> vector<16x32xf32>
    %c0_100 = arith.constant 0 : index
    %c0_101 = arith.constant 0 : index
    %279 = vector.load %arg19[%c0_100, %c0_101] : memref<1x32xf32, #tpu.memory_space<vmem>>, vector<1x32xf32>
    %280 = vector.broadcast %279 : vector<1x32xf32> to vector<16x32xf32>
    %281 = arith.addf %278, %280 : vector<16x32xf32>
    %282 = arith.addf %190, %281 : vector<16x32xf32>
    %c0_102 = arith.constant 0 : index
    %c0_103 = arith.constant 0 : index
    %283 = vector.load %arg20[%c0_102, %c0_103] : memref<1x32xf32, #tpu.memory_space<vmem>>, vector<1x32xf32>
    %c0_104 = arith.constant 0 : index
    %c0_105 = arith.constant 0 : index
    %284 = vector.load %arg21[%c0_104, %c0_105] : memref<1x32xf32, #tpu.memory_space<vmem>>, vector<1x32xf32>
    %cst_106 = arith.constant dense<0.000000e+00> : vector<16xf32>
    %285 = vector.multi_reduction <add>, %282, %cst_106 [1] : vector<16x32xf32> to vector<16xf32>
    %286 = vector.shape_cast %285 : vector<16xf32> to vector<16x1xf32>
    %cst_107 = arith.constant 3.200000e+01 : f32
    %287 = vector.broadcast %cst_107 : f32 to vector<16x1xf32>
    %288 = arith.divf %286, %287 : vector<16x1xf32>
    %289 = vector.broadcast %288 : vector<16x1xf32> to vector<16x32xf32>
    %290 = arith.subf %282, %289 : vector<16x32xf32>
    %291 = vector.broadcast %288 : vector<16x1xf32> to vector<16x32xf32>
    %292 = arith.subf %282, %291 : vector<16x32xf32>
    %293 = arith.mulf %290, %292 : vector<16x32xf32>
    %cst_108 = arith.constant dense<0.000000e+00> : vector<16xf32>
    %294 = vector.multi_reduction <add>, %293, %cst_108 [1] : vector<16x32xf32> to vector<16xf32>
    %295 = vector.shape_cast %294 : vector<16xf32> to vector<16x1xf32>
    %cst_109 = arith.constant 3.200000e+01 : f32
    %296 = vector.broadcast %cst_109 : f32 to vector<16x1xf32>
    %297 = arith.divf %295, %296 : vector<16x1xf32>
    %298 = vector.broadcast %288 : vector<16x1xf32> to vector<16x32xf32>
    %299 = arith.subf %282, %298 : vector<16x32xf32>
    %cst_110 = arith.constant 9.99999996E-13 : f32
    %300 = vector.broadcast %cst_110 : f32 to vector<16x1xf32>
    %301 = arith.addf %297, %300 : vector<16x1xf32>
    %302 = math.rsqrt %301 : vector<16x1xf32>
    %303 = vector.broadcast %302 : vector<16x1xf32> to vector<16x32xf32>
    %304 = arith.mulf %299, %303 : vector<16x32xf32>
    %305 = vector.broadcast %283 : vector<1x32xf32> to vector<16x32xf32>
    %306 = arith.mulf %304, %305 : vector<16x32xf32>
    %307 = vector.broadcast %284 : vector<1x32xf32> to vector<16x32xf32>
    %308 = arith.addf %306, %307 : vector<16x32xf32>
    %c0_111 = arith.constant 0 : index
    %c0_112 = arith.constant 0 : index
    %309 = vector.load %arg22[%c0_111, %c0_112] : memref<32x64xf32, #tpu.memory_space<vmem>>, vector<32x64xf32>
    %cst_113 = arith.constant dense<0.000000e+00> : vector<16x64xf32>
    %310 = tpu.matmul %308, %309, %cst_113 {dimension_numbers = #tpu.dot_dimension_numbers<[1], [0], [0], [1], [0, 0, 1, 1], [], []>} : vector<16x32xf32>, vector<32x64xf32>, vector<16x64xf32> -> vector<16x64xf32>
    %c0_114 = arith.constant 0 : index
    %c0_115 = arith.constant 0 : index
    %311 = vector.load %arg23[%c0_114, %c0_115] : memref<1x64xf32, #tpu.memory_space<vmem>>, vector<1x64xf32>
    %312 = vector.broadcast %311 : vector<1x64xf32> to vector<16x64xf32>
    %313 = arith.addf %310, %312 : vector<16x64xf32>
    %cst_116 = arith.constant 5.000000e-01 : f32
    %314 = vector.broadcast %cst_116 : f32 to vector<16x64xf32>
    %315 = arith.mulf %314, %313 : vector<16x64xf32>
    %cst_117 = arith.constant 0.707106769 : f32
    %316 = vector.broadcast %cst_117 : f32 to vector<16x64xf32>
    %317 = arith.mulf %313, %316 : vector<16x64xf32>
    %318 = math.erf %317 : vector<16x64xf32>
    %cst_118 = arith.constant 1.000000e+00 : f32
    %319 = vector.broadcast %cst_118 : f32 to vector<16x64xf32>
    %320 = arith.addf %319, %318 : vector<16x64xf32>
    %321 = arith.mulf %315, %320 : vector<16x64xf32>
    %c0_119 = arith.constant 0 : index
    %c0_120 = arith.constant 0 : index
    %322 = vector.load %arg24[%c0_119, %c0_120] : memref<64x32xf32, #tpu.memory_space<vmem>>, vector<64x32xf32>
    %cst_121 = arith.constant dense<0.000000e+00> : vector<16x32xf32>
    %323 = tpu.matmul %321, %322, %cst_121 {dimension_numbers = #tpu.dot_dimension_numbers<[1], [0], [0], [1], [0, 0, 1, 1], [], []>} : vector<16x64xf32>, vector<64x32xf32>, vector<16x32xf32> -> vector<16x32xf32>
    %c0_122 = arith.constant 0 : index
    %c0_123 = arith.constant 0 : index
    %324 = vector.load %arg25[%c0_122, %c0_123] : memref<1x32xf32, #tpu.memory_space<vmem>>, vector<1x32xf32>
    %325 = vector.broadcast %324 : vector<1x32xf32> to vector<16x32xf32>
    %326 = arith.addf %323, %325 : vector<16x32xf32>
    %327 = arith.addf %308, %326 : vector<16x32xf32>
    %c0_124 = arith.constant 0 : index
    %c0_125 = arith.constant 0 : index
    %328 = vector.load %arg26[%c0_124, %c0_125] : memref<1x32xf32, #tpu.memory_space<vmem>>, vector<1x32xf32>
    %c0_126 = arith.constant 0 : index
    %c0_127 = arith.constant 0 : index
    %329 = vector.load %arg27[%c0_126, %c0_127] : memref<1x32xf32, #tpu.memory_space<vmem>>, vector<1x32xf32>
    %cst_128 = arith.constant dense<0.000000e+00> : vector<16xf32>
    %330 = vector.multi_reduction <add>, %327, %cst_128 [1] : vector<16x32xf32> to vector<16xf32>
    %331 = vector.shape_cast %330 : vector<16xf32> to vector<16x1xf32>
    %cst_129 = arith.constant 3.200000e+01 : f32
    %332 = vector.broadcast %cst_129 : f32 to vector<16x1xf32>
    %333 = arith.divf %331, %332 : vector<16x1xf32>
    %334 = vector.broadcast %333 : vector<16x1xf32> to vector<16x32xf32>
    %335 = arith.subf %327, %334 : vector<16x32xf32>
    %336 = vector.broadcast %333 : vector<16x1xf32> to vector<16x32xf32>
    %337 = arith.subf %327, %336 : vector<16x32xf32>
    %338 = arith.mulf %335, %337 : vector<16x32xf32>
    %cst_130 = arith.constant dense<0.000000e+00> : vector<16xf32>
    %339 = vector.multi_reduction <add>, %338, %cst_130 [1] : vector<16x32xf32> to vector<16xf32>
    %340 = vector.shape_cast %339 : vector<16xf32> to vector<16x1xf32>
    %cst_131 = arith.constant 3.200000e+01 : f32
    %341 = vector.broadcast %cst_131 : f32 to vector<16x1xf32>
    %342 = arith.divf %340, %341 : vector<16x1xf32>
    %343 = vector.broadcast %333 : vector<16x1xf32> to vector<16x32xf32>
    %344 = arith.subf %327, %343 : vector<16x32xf32>
    %cst_132 = arith.constant 9.99999996E-13 : f32
    %345 = vector.broadcast %cst_132 : f32 to vector<16x1xf32>
    %346 = arith.addf %342, %345 : vector<16x1xf32>
    %347 = math.rsqrt %346 : vector<16x1xf32>
    %348 = vector.broadcast %347 : vector<16x1xf32> to vector<16x32xf32>
    %349 = arith.mulf %344, %348 : vector<16x32xf32>
    %350 = vector.broadcast %328 : vector<1x32xf32> to vector<16x32xf32>
    %351 = arith.mulf %349, %350 : vector<16x32xf32>
    %352 = vector.broadcast %329 : vector<1x32xf32> to vector<16x32xf32>
    %353 = arith.addf %351, %352 : vector<16x32xf32>
    %c0_133 = arith.constant 0 : index
    %c0_134 = arith.constant 0 : index
    %354 = vector.load %arg28[%c0_133, %c0_134] : memref<16x32xf32, #tpu.memory_space<vmem>>, vector<16x32xf32>
    tpu.vector_store %arg28[%c0_133, %c0_134], %353 {strides = array<i32>} : memref<16x32xf32, #tpu.memory_space<vmem>>, vector<16x32xf32>,
    return
  }
}

</mosaic_0001>

<bundles_post_ra>
// kernel: tpu_custom_call.1
= control target key start
LH: loop header
LB: loop body
LE: loop exit
PB: predicated region body
PF: predicated region fallthrough
CT: control target
= control target key end

     0   :  { %s4143_s0 = inlined_call_operand.hbm [shape: f32[16,32], index: 0, kind: input, shape index: {}]   ;;  %s4144_s1 = inlined_call_operand.hbm [shape: f32[2,8], index: 1, kind: input, shape index: {}]   ;;  %s4145_s2 = inlined_call_operand.hbm [shape: f32[1,32], index: 2, kind: input, shape index: {}]   ;;  %s4146_s3 = inlined_call_operand.hbm [shape: f32[1,32], index: 3, kind: input, shape index: {}]   ;;  %s4147_s4 = inlined_call_operand.vmem [shape: f32[32,96], index: 4, kind: input, shape index: {}]   ;;  %s4148_s5 = inlined_call_operand.hbm [shape: f32[1,96], index: 5, kind: input, shape index: {}]   ;;  %s4149_s6 = inlined_call_operand.vmem [shape: f32[32,32], index: 6, kind: input, shape index: {}]   ;;  %s4150_s7 = inlined_call_operand.hbm [shape: f32[1,32], index: 7, kind: input, shape index: {}]   ;;  %s4151_s8 = inlined_call_operand.hbm [shape: f32[1,32], index: 8, kind: input, shape index: {}]   ;;  %s4152_s9 = inlined_call_operand.hbm [shape: f32[1,32], index: 9, kind: input, shape index: {}]   ;;  %s4153_s10 = inlined_call_operand.vmem [shape: f32[32,64], index: 10, kind: input, shape index: {}]   ;;  %s4154_s11 = inlined_call_operand.hbm [shape: f32[1,64], index: 11, kind: input, shape index: {}]   ;;  %s4155_s12 = inlined_call_operand.vmem [shape: f32[64,32], index: 12, kind: input, shape index: {}]   ;;  %s4156_s13 = inlined_call_operand.hbm [shape: f32[1,32], index: 13, kind: input, shape index: {}]   ;;  %s4157_s14 = inlined_call_operand.hbm [shape: f32[1,32], index: 14, kind: input, shape index: {}]   ;;  %s4158_s15 = inlined_call_operand.hbm [shape: f32[1,32], index: 15, kind: input, shape index: {}]   ;;  %s4159_s16 = inlined_call_operand.vmem [shape: f32[32,96], index: 16, kind: input, shape index: {}]   ;;  %s4160_s17 = inlined_call_operand.hbm [shape: f32[1,96], index: 17, kind: input, shape index: {}]   ;;  %s4161_s18 = inlined_call_operand.vmem [shape: f32[32,32], index: 18, kind: input, shape index: {}]   ;;  %s4162_s19 = inlined_call_operand.vmem [shape: f32[1,32], index: 19, kind: input, shape index: {}]   ;;  %s4163_s20 = inlined_call_operand.vmem [shape: f32[1,32], index: 20, kind: input, shape index: {}]   ;;  %s4164_s21 = inlined_call_operand.vmem [shape: f32[1,32], index: 21, kind: input, shape index: {}]   ;;  %s4165_s22 = inlined_call_operand.vmem [shape: f32[32,64], index: 22, kind: input, shape index: {}]   ;;  %s4166_s23 = inlined_call_operand.vmem [shape: f32[1,64], index: 23, kind: input, shape index: {}]   ;;  %s4167_s24 = inlined_call_operand.vmem [shape: f32[64,32], index: 24, kind: input, shape index: {}]   ;;  %s4168_s25 = inlined_call_operand.vmem [shape: f32[1,32], index: 25, kind: input, shape index: {}]   ;;  %s4169_s26 = inlined_call_operand.vmem [shape: f32[1,32], index: 26, kind: input, shape index: {}]   ;;  %s4170_s27 = inlined_call_operand.vmem [shape: f32[1,32], index: 27, kind: input, shape index: {}]   ;;  %s4171_s28 = inlined_call_operand.hbm [shape: f32[16,32], index: 28, kind: output, shape index: {}]  }
   0x1   :  { %4186 = sst [smem:[#allocation32_spill]] %s4143_s0 }
   0x2   :  { %4187 = sst [smem:[#allocation33_spill]] %s4144_s1 }
   0x3   :  { %4188 = sst [smem:[#allocation34_spill]] %s4145_s2 }
   0x4   :  { %4189 = sst [smem:[#allocation35_spill]] %s4146_s3 }
   0x5   :  { %4190 = sst [smem:[#allocation36_spill]] %s4147_s4 }
   0x6   :  { %4191 = sst [smem:[#allocation37_spill]] %s4148_s5 }
   0x7   :  { %4192 = sst [smem:[#allocation38_spill]] %s4149_s6 }
   0x8   :  { %4193 = sst [smem:[#allocation39_spill]] %s4150_s7 }
   0x9   :  { %4194 = sst [smem:[#allocation40_spill]] %s4151_s8 }
   0xa   :  { %4195 = sst [smem:[#allocation41_spill]] %s4152_s9 }
   0xb   :  { %4196 = sst [smem:[#allocation42_spill]] %s4153_s10 }
   0xc   :  { %4197 = sst [smem:[#allocation43_spill]] %s4154_s11 }
   0xd   :  { %4198 = sst [smem:[#allocation44_spill]] %s4155_s12 }
   0xe   :  { %4199 = sst [smem:[#allocation45_spill]] %s4171_s28 }
   0xf   :  { %33 = vsyncpa [#allocation3], 0 }
  0x10   :  { %34 = vsyncpa [#allocation6], 0 }
  0x11   :  { %35 = vsyncpa [#allocation9], 0 }
  0x12   :  { %36 = vsyncpa [#allocation12], 0 }
  0x13   :  { %37 = vsyncpa [#allocation15], 0 }
  0x14   :  { %38 = vsyncpa [#allocation18], 0 }
  0x15   :  { %39 = vsyncpa [#allocation21], 0 }
  0x16   :  { %40 = vsyncpa [#allocation4], 0  ;;  %s3445_s8 = smov [#allocation5]   ;;  %s3446_s9 = smov [#allocation8]  }
  0x17   :  { %s59_s5 = sshll.u32 %s3445_s8, 4  ;;  %s79_s30 = sshll.u32 %s3446_s9, 4  ;;  %s60_s5 = int_to_ptr.vmem [resolvable:$true] %s59_s5  ;;  %s80_s30 = int_to_ptr.vmem [resolvable:$true] %s79_s30 }
  0x18   :  { %s4200_s10 = sld [smem:[#allocation33_spill]] }
  0x1e   :  { %s3121_s0 = scalar_lea.hbm %s4200_s10, 32 }
  0x1f   :  { %p3122_p0 = scmp.ne.s32.totalorder %s4200_s10, %s3121_s0  ;;  %p3125_p1 = scmp.lt.u32.totalorder %s3121_s0, %s4200_s10 }
  0x21   :  { %p3127_p2 = pnand %p3125_p1, %p3122_p0 }
  0x23   :  { %3130 = shalt.err (!%p3127_p2)
}
  0x24   :  { %s3131_s12 = scalar_lea.vmem %s60_s5, 32  ;;  %p3136_p4 = scmp.lt.s32.totalorder %s60_s5, %s60_s5 }
  0x25   :  { %p3132_p3 = scmp.ne.s32.totalorder %s60_s5, %s3131_s12  ;;  %p3137_p5 = scmp.lt.s32.totalorder %s3131_s12, %s3131_s12 }
  0x27   :  { %p3138_p6 = por %p3137_p5, %p3136_p4 }
  0x29   :  { %p3139_p7 = pnand %p3138_p6, %p3132_p3 }
  0x2b   :  { %3142 = shalt.err (!%p3139_p7)
}
  0x2c   :  { %62 = dma.hbm_to_vmem [thread:$0]  %s4200_s10, 32, %s60_s5, [#allocation6]  }
  0x2d   :  { %s4201_s3 = sld [smem:[#allocation35_spill]] }
  0x33   :  { %s3143_s6 = scalar_lea.hbm %s4201_s3, 16 }
  0x34   :  { %p3144_p8 = scmp.ne.s32.totalorder %s4201_s3, %s3143_s6  ;;  %p3147_p9 = scmp.lt.u32.totalorder %s3143_s6, %s4201_s3 }
  0x36   :  { %p3149_p10 = pnand %p3147_p9, %p3144_p8 }
  0x38   :  { %3152 = shalt.err (!%p3149_p10)
}
  0x39   :  { %s3153_s7 = scalar_lea.vmem %s80_s30, 16  ;;  %s3157_s12 = scalar_lea.vmem %s80_s30, 32 }
  0x3a   :  { %p3154_p11 = scmp.ne.s32.totalorder %s80_s30, %s3153_s7  ;;  %p3158_p12 = scmp.lt.s32.totalorder %s80_s30, %s80_s30 }
  0x3b   :  { %p3159_p13 = scmp.lt.s32.totalorder %s3157_s12, %s3153_s7 }
  0x3d   :  { %p3160_p0 = por %p3159_p13, %p3158_p12 }
  0x3f   :  { %p3161_p1 = pnand %p3160_p0, %p3154_p11 }
  0x41   :  { %3164 = shalt.err (!%p3161_p1)
}
  0x42   :  { %82 = dma.hbm_to_vmem [thread:$0]  %s4201_s3, 16, %s80_s30, [#allocation9]  }
  0x43   :  { %s3447_s1 = smov [#allocation11]   ;;  %s3448_s8 = smov [#allocation14]  }
  0x44   :  { %s103_s4 = sshll.u32 %s3447_s1, 4  ;;  %s123_s9 = sshll.u32 %s3448_s8, 4  ;;  %s104_s4 = int_to_ptr.vmem [resolvable:$true] %s103_s4  ;;  %s124_s9 = int_to_ptr.vmem [resolvable:$true] %s123_s9 }
  0x45   :  { %s4202_s29 = sld [smem:[#allocation39_spill]] }
  0x4b   :  { %s3165_s0 = scalar_lea.hbm %s4202_s29, 16 }
  0x4c   :  { %p3166_p2 = scmp.ne.s32.totalorder %s4202_s29, %s3165_s0  ;;  %p3169_p3 = scmp.lt.u32.totalorder %s3165_s0, %s4202_s29 }
  0x4e   :  { %p3171_p4 = pnand %p3169_p3, %p3166_p2 }
  0x50   :  { %3174 = shalt.err (!%p3171_p4)
}
  0x51   :  { %s3175_s30 = scalar_lea.vmem %s104_s4, 16  ;;  %s3179_s3 = scalar_lea.vmem %s104_s4, 32 }
  0x52   :  { %p3176_p5 = scmp.ne.s32.totalorder %s104_s4, %s3175_s30  ;;  %p3180_p6 = scmp.lt.s32.totalorder %s104_s4, %s104_s4 }
  0x53   :  { %p3181_p7 = scmp.lt.s32.totalorder %s3179_s3, %s3175_s30 }
  0x55   :  { %p3182_p8 = por %p3181_p7, %p3180_p6 }
  0x57   :  { %p3183_p9 = pnand %p3182_p8, %p3176_p5 }
  0x59   :  { %3186 = shalt.err (!%p3183_p9)
}
  0x5a   :  { %106 = dma.hbm_to_vmem [thread:$0]  %s4202_s29, 16, %s104_s4, [#allocation12]  }
  0x5b   :  { %s4203_s8 = sld [smem:[#allocation41_spill]] }
  0x61   :  { %s3187_s6 = scalar_lea.hbm %s4203_s8, 16 }
  0x62   :  { %p3188_p10 = scmp.ne.s32.totalorder %s4203_s8, %s3187_s6  ;;  %p3191_p11 = scmp.lt.u32.totalorder %s3187_s6, %s4203_s8 }
  0x64   :  { %p3193_p12 = pnand %p3191_p11, %p3188_p10 }
  0x66   :  { %3196 = shalt.err (!%p3193_p12)
}
  0x67   :  { %s3197_s12 = scalar_lea.vmem %s124_s9, 16  ;;  %s3201_s30 = scalar_lea.vmem %s124_s9, 32 }
  0x68   :  { %p3198_p13 = scmp.ne.s32.totalorder %s124_s9, %s3197_s12  ;;  %p3202_p0 = scmp.lt.s32.totalorder %s124_s9, %s124_s9 }
  0x69   :  { %p3203_p1 = scmp.lt.s32.totalorder %s3201_s30, %s3197_s12 }
  0x6b   :  { %p3204_p2 = por %p3203_p1, %p3202_p0 }
  0x6d   :  { %p3205_p3 = pnand %p3204_p2, %p3198_p13 }
  0x6f   :  { %3208 = shalt.err (!%p3205_p3)
}
  0x70   :  { %126 = dma.hbm_to_vmem [thread:$0]  %s4203_s8, 16, %s124_s9, [#allocation15]  }
  0x71   :  { %s3449_s3 = smov [#allocation17]   ;;  %s3450_s10 = smov [#allocation20]  }
  0x72   :  { %s147_s5 = sshll.u32 %s3449_s3, 4  ;;  %s167_s28 = sshll.u32 %s3450_s10, 4  ;;  %s148_s5 = int_to_ptr.vmem [resolvable:$true] %s147_s5  ;;  %s168_s28 = int_to_ptr.vmem [resolvable:$true] %s167_s28 }
  0x73   :  { %s3209_s11 = scalar_lea.hbm %s4156_s13, 16 }
  0x74   :  { %p3210_p4 = scmp.ne.s32.totalorder %s4156_s13, %s3209_s11  ;;  %p3213_p5 = scmp.lt.u32.totalorder %s3209_s11, %s4156_s13 }
  0x76   :  { %p3215_p6 = pnand %p3213_p5, %p3210_p4 }
  0x78   :  { %3218 = shalt.err (!%p3215_p6)
}
  0x79   :  { %s3219_s9 = scalar_lea.vmem %s148_s5, 16  ;;  %s3223_s8 = scalar_lea.vmem %s148_s5, 32 }
  0x7a   :  { %p3220_p7 = scmp.ne.s32.totalorder %s148_s5, %s3219_s9  ;;  %p3224_p8 = scmp.lt.s32.totalorder %s148_s5, %s148_s5 }
  0x7b   :  { %p3225_p9 = scmp.lt.s32.totalorder %s3223_s8, %s3219_s9 }
  0x7d   :  { %p3226_p10 = por %p3225_p9, %p3224_p8 }
  0x7f   :  { %p3227_p11 = pnand %p3226_p10, %p3220_p7 }
  0x81   :  { %3230 = shalt.err (!%p3227_p11)
}
  0x82   :  { %150 = dma.hbm_to_vmem [thread:$0]  %s4156_s13, 16, %s148_s5, [#allocation18]  }
  0x83   :  { %s3231_s10 = scalar_lea.hbm %s4158_s15, 16 }
  0x84   :  { %p3232_p12 = scmp.ne.s32.totalorder %s4158_s15, %s3231_s10  ;;  %p3235_p13 = scmp.lt.u32.totalorder %s3231_s10, %s4158_s15 }
  0x86   :  { %p3237_p0 = pnand %p3235_p13, %p3232_p12 }
  0x88   :  { %3240 = shalt.err (!%p3237_p0)
}
  0x89   :  { %s3241_s2 = scalar_lea.vmem %s168_s28, 16  ;;  %s3245_s7 = scalar_lea.vmem %s168_s28, 32 }
  0x8a   :  { %p3242_p1 = scmp.ne.s32.totalorder %s168_s28, %s3241_s2  ;;  %p3246_p2 = scmp.lt.s32.totalorder %s168_s28, %s168_s28 }
  0x8b   :  { %p3247_p3 = scmp.lt.s32.totalorder %s3245_s7, %s3241_s2 }
  0x8d   :  { %p3248_p4 = por %p3247_p3, %p3246_p2 }
  0x8f   :  { %p3249_p5 = pnand %p3248_p4, %p3242_p1 }
  0x91   :  { %3252 = shalt.err (!%p3249_p5)
}
  0x92   :  { %170 = dma.hbm_to_vmem [thread:$0]  %s4158_s15, 16, %s168_s28, [#allocation21]  }
  0x93   :  { %s3451_s12 = smov [#allocation2]   ;;  %s4204_s4 = sld [smem:[#allocation32_spill]] }
  0x94   :  { %s46_s9 = sshll.u32 %s3451_s12, 4  ;;  %s47_s9 = int_to_ptr.vmem [resolvable:$true] %s46_s9 }
  0x99   :  { %s3253_s29 = scalar_lea.hbm %s4204_s4, 256 }
  0x9a   :  { %p3254_p6 = scmp.ne.s32.totalorder %s4204_s4, %s3253_s29  ;;  %p3257_p7 = scmp.lt.u32.totalorder %s3253_s29, %s4204_s4 }
  0x9c   :  { %p3259_p8 = pnand %p3257_p7, %p3254_p6 }
  0x9e   :  { %3262 = shalt.err (!%p3259_p8)
}
  0x9f   :  { %s3263_s11 = scalar_lea.vmem %s47_s9, 256  ;;  %p3268_p10 = scmp.lt.s32.totalorder %s47_s9, %s47_s9 }
  0xa0   :  { %p3264_p9 = scmp.ne.s32.totalorder %s47_s9, %s3263_s11  ;;  %p3269_p11 = scmp.lt.s32.totalorder %s3263_s11, %s3263_s11 }
  0xa2   :  { %p3270_p12 = por %p3269_p11, %p3268_p10 }
  0xa4   :  { %p3271_p13 = pnand %p3270_p12, %p3264_p9 }
  0xa6   :  { %3274 = shalt.err (!%p3271_p13)
}
  0xa7   :  { %s3452_s15 = smov 128   ;;  %s3453_s28 = smov 8  }
  0xa8   :  { %52 = dma.hbm_to_vmem [thread:$0]  %s4204_s4, 256, %s47_s9, [#allocation3], %s3452_s15, %s3452_s15, %s3453_s28  }
  0xa9   :  { %s3454_s7 = smov [#allocation7]   ;;  %s3455_s5 = smov [#allocation10]  }
  0xaa   :  { %s69_s13 = sshll.u32 %s3454_s7, 4  ;;  %s91_s12 = sshll.u32 %s3455_s5, 4  ;;  %s70_s13 = int_to_ptr.vmem [resolvable:$true] %s69_s13  ;;  %s92_s12 = int_to_ptr.vmem [resolvable:$true] %s91_s12 }
  0xab   :  { %s4205_s29 = sld [smem:[#allocation34_spill]] }
  0xb1   :  { %s3275_s3 = scalar_lea.hbm %s4205_s29, 16 }
  0xb2   :  { %p3276_p0 = scmp.ne.s32.totalorder %s4205_s29, %s3275_s3  ;;  %p3279_p1 = scmp.lt.u32.totalorder %s3275_s3, %s4205_s29 }
  0xb4   :  { %p3281_p2 = pnand %p3279_p1, %p3276_p0 }
  0xb6   :  { %3284 = shalt.err (!%p3281_p2)
}
  0xb7   :  { %s3285_s9 = scalar_lea.vmem %s70_s13, 16  ;;  %s3289_s4 = scalar_lea.vmem %s70_s13, 32 }
  0xb8   :  { %p3286_p3 = scmp.ne.s32.totalorder %s70_s13, %s3285_s9  ;;  %p3290_p4 = scmp.lt.s32.totalorder %s70_s13, %s70_s13 }
  0xb9   :  { %p3291_p5 = scmp.lt.s32.totalorder %s3289_s4, %s3285_s9 }
  0xbb   :  { %p3292_p6 = por %p3291_p5, %p3290_p4 }
  0xbd   :  { %p3293_p7 = pnand %p3292_p6, %p3286_p3 }
  0xbf   :  { %3296 = shalt.err (!%p3293_p7)
}
  0xc0   :  { %72 = dma.hbm_to_vmem [thread:$0]  %s4205_s29, 16, %s70_s13, [#allocation6]  }
  0xc1   :  { %s4206_s8 = sld [smem:[#allocation37_spill]] }
  0xc7   :  { %s3297_s30 = scalar_lea.hbm %s4206_s8, 16 }
  0xc8   :  { %p3298_p8 = scmp.ne.s32.totalorder %s4206_s8, %s3297_s30  ;;  %p3301_p9 = scmp.lt.u32.totalorder %s3297_s30, %s4206_s8 }
  0xca   :  { %p3303_p10 = pnand %p3301_p9, %p3298_p8 }
  0xcc   :  { %3306 = shalt.err (!%p3303_p10)
}
  0xcd   :  { %s3307_s11 = scalar_lea.vmem %s92_s12, 16  ;;  %s3311_s9 = scalar_lea.vmem %s92_s12, 32 }
  0xce   :  { %p3308_p11 = scmp.ne.s32.totalorder %s92_s12, %s3307_s11  ;;  %p3312_p12 = scmp.lt.s32.totalorder %s92_s12, %s92_s12 }
  0xcf   :  { %p3313_p13 = scmp.lt.s32.totalorder %s3311_s9, %s3307_s11 }
  0xd1   :  { %p3314_p0 = por %p3313_p13, %p3312_p12 }
  0xd3   :  { %p3315_p1 = pnand %p3314_p0, %p3308_p11 }
  0xd5   :  { %3318 = shalt.err (!%p3315_p1)
}
  0xd6   :  { %94 = dma.hbm_to_vmem [thread:$0]  %s4206_s8, 16, %s92_s12, [#allocation9]  }
  0xd7   :  { %s3456_s4 = smov [#allocation13]   ;;  %s3457_s2 = smov [#allocation16]  }
  0xd8   :  { %s113_s0 = sshll.u32 %s3456_s4, 4  ;;  %s135_s7 = sshll.u32 %s3457_s2, 4  ;;  %s114_s0 = int_to_ptr.vmem [resolvable:$true] %s113_s0  ;;  %s136_s7 = int_to_ptr.vmem [resolvable:$true] %s135_s7 }
  0xd9   :  { %s4207_s3 = sld [smem:[#allocation40_spill]] }
  0xdf   :  { %s3319_s10 = scalar_lea.hbm %s4207_s3, 16 }
  0xe0   :  { %p3320_p2 = scmp.ne.s32.totalorder %s4207_s3, %s3319_s10  ;;  %p3323_p3 = scmp.lt.u32.totalorder %s3319_s10, %s4207_s3 }
  0xe2   :  { %p3325_p4 = pnand %p3323_p3, %p3320_p2 }
  0xe4   :  { %3328 = shalt.err (!%p3325_p4)
}
  0xe5   :  { %s3329_s12 = scalar_lea.vmem %s114_s0, 16  ;;  %s3333_s8 = scalar_lea.vmem %s114_s0, 32 }
  0xe6   :  { %p3330_p5 = scmp.ne.s32.totalorder %s114_s0, %s3329_s12  ;;  %p3334_p6 = scmp.lt.s32.totalorder %s114_s0, %s114_s0 }
  0xe7   :  { %p3335_p7 = scmp.lt.s32.totalorder %s3333_s8, %s3329_s12 }
  0xe9   :  { %p3336_p8 = por %p3335_p7, %p3334_p6 }
  0xeb   :  { %p3337_p9 = pnand %p3336_p8, %p3330_p5 }
  0xed   :  { %3340 = shalt.err (!%p3337_p9)
}
  0xee   :  { %116 = dma.hbm_to_vmem [thread:$0]  %s4207_s3, 16, %s114_s0, [#allocation12]  }
  0xef   :  { %s4208_s5 = sld [smem:[#allocation43_spill]] }
  0xf5   :  { %s3341_s30 = scalar_lea.hbm %s4208_s5, 16 }
  0xf6   :  { %p3342_p10 = scmp.ne.s32.totalorder %s4208_s5, %s3341_s30  ;;  %p3345_p11 = scmp.lt.u32.totalorder %s3341_s30, %s4208_s5 }
  0xf8   :  { %p3347_p12 = pnand %p3345_p11, %p3342_p10 }
  0xfa   :  { %3350 = shalt.err (!%p3347_p12)
}
  0xfb   :  { %s3351_s9 = scalar_lea.vmem %s136_s7, 16  ;;  %s3355_s12 = scalar_lea.vmem %s136_s7, 32 }
  0xfc   :  { %p3352_p13 = scmp.ne.s32.totalorder %s136_s7, %s3351_s9  ;;  %p3356_p0 = scmp.lt.s32.totalorder %s136_s7, %s136_s7 }
  0xfd   :  { %p3357_p1 = scmp.lt.s32.totalorder %s3355_s12, %s3351_s9 }
  0xff   :  { %p3358_p2 = por %p3357_p1, %p3356_p0 }
 0x101   :  { %p3359_p3 = pnand %p3358_p2, %p3352_p13 }
 0x103   :  { %3362 = shalt.err (!%p3359_p3)
}
 0x104   :  { %138 = dma.hbm_to_vmem [thread:$0]  %s4208_s5, 16, %s136_s7, [#allocation15]  }
 0x105   :  { %s3458_s8 = smov [#allocation19]   ;;  %s3459_s29 = smov [#allocation22]  }
 0x106   :  { %s157_s13 = sshll.u32 %s3458_s8, 4  ;;  %s179_s4 = sshll.u32 %s3459_s29, 4  ;;  %s158_s13 = int_to_ptr.vmem [resolvable:$true] %s157_s13  ;;  %s180_s4 = int_to_ptr.vmem [resolvable:$true] %s179_s4 }
 0x107   :  { %s3363_s10 = scalar_lea.hbm %s4157_s14, 16 }
 0x108   :  { %p3364_p4 = scmp.ne.s32.totalorder %s4157_s14, %s3363_s10  ;;  %p3367_p5 = scmp.lt.u32.totalorder %s3363_s10, %s4157_s14 }
 0x10a   :  { %p3369_p6 = pnand %p3367_p5, %p3364_p4 }
 0x10c   :  { %3372 = shalt.err (!%p3369_p6)
}
 0x10d   :  { %s3373_s7 = scalar_lea.vmem %s158_s13, 16  ;;  %s3377_s5 = scalar_lea.vmem %s158_s13, 32 }
 0x10e   :  { %p3374_p7 = scmp.ne.s32.totalorder %s158_s13, %s3373_s7  ;;  %p3378_p8 = scmp.lt.s32.totalorder %s158_s13, %s158_s13 }
 0x10f   :  { %p3379_p9 = scmp.lt.s32.totalorder %s3377_s5, %s3373_s7 }
 0x111   :  { %p3380_p10 = por %p3379_p9, %p3378_p8 }
 0x113   :  { %p3381_p11 = pnand %p3380_p10, %p3374_p7 }
 0x115   :  { %3384 = shalt.err (!%p3381_p11)
}
 0x116   :  { %160 = dma.hbm_to_vmem [thread:$0]  %s4157_s14, 16, %s158_s13, [#allocation18]  }
 0x117   :  { %s3385_s29 = scalar_lea.hbm %s4160_s17, 16 }
 0x118   :  { %p3386_p12 = scmp.ne.s32.totalorder %s4160_s17, %s3385_s29  ;;  %p3389_p13 = scmp.lt.u32.totalorder %s3385_s29, %s4160_s17 }
 0x11a   :  { %p3391_p0 = pnand %p3389_p13, %p3386_p12 }
 0x11c   :  { %3394 = shalt.err (!%p3391_p0)
}
 0x11d   :  { %s3395_s6 = scalar_lea.vmem %s180_s4, 16  ;;  %s3399_s11 = scalar_lea.vmem %s180_s4, 32 }
 0x11e   :  { %p3396_p1 = scmp.ne.s32.totalorder %s180_s4, %s3395_s6  ;;  %p3400_p2 = scmp.lt.s32.totalorder %s180_s4, %s180_s4 }
 0x11f   :  { %p3401_p3 = scmp.lt.s32.totalorder %s3399_s11, %s3395_s6 }
 0x121   :  { %p3402_p4 = por %p3401_p3, %p3400_p2 }
 0x123   :  { %p3403_p5 = pnand %p3402_p4, %p3396_p1 }
 0x125   :  { %3406 = shalt.err (!%p3403_p5)
}
 0x126   :  { %182 = dma.hbm_to_vmem [thread:$0]  %s4160_s17, 16, %s180_s4, [#allocation21]  }
 0x127   :  { %3429 = dma.done.wait [#allocation3], 256  }
 0x128   :  { %3430 = vsyncadd [#allocation3], 4294967040 }
 0x129   :  { %3431 = dma.done.wait [#allocation6], 48  }
 0x12a   :  { %3432 = vsyncadd [#allocation6], 4294967248 }
 0x12b   :  { %3433 = dma.done.wait [#allocation9], 32  }
 0x12c   :  { %3434 = vsyncadd [#allocation9], 4294967264 }
 0x12d   :  { %3435 = dma.done.wait [#allocation12], 32  }
 0x12e   :  { %3436 = vsyncadd [#allocation12], 4294967264 }
 0x12f   :  { %3437 = dma.done.wait [#allocation15], 32  }
 0x130   :  { %3438 = vsyncadd [#allocation15], 4294967264 }
 0x131   :  { %3439 = dma.done.wait [#allocation18], 32  }
 0x132   :  { %3440 = vsyncadd [#allocation18], 4294967264 }
 0x133   :  { %3441 = dma.done.wait [#allocation21], 32  }
 0x134   :  { %3442 = vsyncadd [#allocation21], 4294967264  ;;  %vm246_vm0 = vcmask 261120   ;;  %v242_v0 = vld [vmem:[#allocation2] sm:$0xff]  ;;  %v243_v1 = vld [vmem:[#allocation2 + $0x8] sm:$0xff]  ;;  %s4209_s9 = sld [smem:[#allocation36_spill]]  ;;  %v462_v48 = vlaneseq }
 0x135   :  { %v247_v2 = vsel %vm246_vm0, %v242_v0, 0.0  ;;  %v250_v3 = vsel %vm246_vm0, %v243_v1, 0.0  ;;  %v2627_v27 = vld [vmem:[#allocation7] ss:$0 sm:$0xff]  ;;  %v2628_v29 = vld [vmem:[#allocation8] ss:$0 sm:$0xff] }
 0x136   :  { %248 = vadd.xlane.f32.xlu0 %v247_v2  ;;  %v3460_v36 = vmov 0.0   ;;  %vm3461_vm1 = vmmov 0   ;;  %v2629_v37 = vld [vmem:[#allocation10] ss:$0 sm:$0xff]  ;;  %s3462_s29 = smov 80   ;;  %s3463_s2 = smov 96  }
 0x137   :  { %2794 = vmatprep.subr.mxu0 %v3460_v36  ;;  %2796 = vmatprep.mubr.msk.f32.mxu0 %vm3461_vm1, %v3460_v36  ;;  %s3464_s30 = smov 112   ;;  %vm386_vm2 = vcmask 130048   ;;  %v463_v49 = vshrl.u32 %v462_v48, 7  ;;  %v290_v51 = vld [vmem:[#allocation5] sm:$0x3]  ;;  %vm467_vm3 = vcmask 64512  }
 0x138   :  { %s3465_s10 = smov 48   ;;  %s3466_s1 = smov 64   ;;  %vm1324_vm4 = vcmask 523264  }
 0x139   :  { %v464_v50 = vsub.s32 0, %v463_v49  ;;  %v807_v60 = vsub.s32 1, %v463_v49  ;;  %s4210_s14 = sld [smem:[#allocation38_spill]]  ;;  %s3467_s12 = smov 16  }
 0x13a   :  { %251 = vadd.xlane.f32.xlu0 %v250_v3  ;;  %v291_v14 = vld [vmem:[%s4209_s9] sm:$0xff]  ;;  %v292_v15 = vld [vmem:[%s4209_s9 + $0x8] sm:$0xff]  ;;  %v293_v16 = vld [vmem:[%s4209_s9 + $0x10] sm:$0xff]  ;;  %s4211_s8 = sld [smem:[#allocation42_spill]]  ;;  %s4212_s5 = sld [smem:[#allocation44_spill]] }
 0x13b   :  { %v2957_v17 = vpack.c.bf16 %v292_v15, %v291_v14  ;;  %v294_v18 = vld [vmem:[%s4209_s9 + $0x18] sm:$0xff]  ;;  %v3838_v52 = vrot.slane %v290_v51, %v464_v50  ;;  %s3468_s4 = smov [#allocation23]  }
 0x13c   :  { %v2961_v19 = vpack.c.bf16 %v294_v18, %v293_v16  ;;  %s2609_s9 = sshll.u32 %s3468_s4, 4  ;;  %s2610_s9 = int_to_ptr.vmem [resolvable:$true] %s2609_s9 }
 0x13d   :  { %2958 = vmatprep.subr.bf16.mxu1 %v2957_v17  ;;  %p3412_p7 = scmp.lt.s32.totalorder %s2610_s9, %s2610_s9 }
 0x13e   :  { %2960 = vmatpush3.bf16.msra.mxu1 %v2957_v17 }
 0x13f   :  { %2962 = vmatprep.subr.bf16.mxu1 %v2961_v19  ;;  %v1069_v50 = vld [vmem:[%s4210_s14] sm:$0xff] }
 0x142   :  { %2964 = vmatpush3.bf16.msra.mxu1 %v2961_v19 }
 0x143   :  { %2784 = vmatprep.subr.mxu1 %v3460_v36 }
 0x1c3   :  { %v249_v4 = vpop.xlane.xlu0 %248 }
 0x1c4   :  { %v254_v5 = vmul.f32 0.03125, %v249_v4 }
 0x1c6   :  { %v256_v6 = vsub.f32 %v242_v0, %v254_v5  ;;  %v3844_v0 = vrot.slane %v290_v51, %v807_v60  ;;  %v1070_v51 = vld [vmem:[%s4210_s14 + $0x8] sm:$0xff] }
 0x1c7   :  { %v252_v7 = vpop.xlane.xlu0 %251 }
 0x1c8   :  { %v255_v8 = vmul.f32 0.03125, %v252_v7  ;;  %v258_v9 = vmul.f32 %v256_v6, %v256_v6 }
 0x1ca   :  { %v257_v10 = vsub.f32 %v243_v1, %v255_v8  ;;  %v260_v11 = vsel %vm246_vm0, %v258_v9, 0.0 }
 0x1cb   :  { %261 = vadd.xlane.f32.xlu1 %v260_v11 }
 0x1cc   :  { %v259_v12 = vmul.f32 %v257_v10, %v257_v10 }
 0x1ce   :  { %v263_v13 = vsel %vm246_vm0, %v259_v12, 0.0 }
 0x1cf   :  { %264 = vadd.xlane.f32.xlu1 %v263_v13 }
 0x258   :  { %v262_v20 = vpop.xlane.xlu1 %261 }
 0x259   :  { %v266_v21 = vmul.f32 0.03125, %v262_v20 }
 0x25b   :  { %v268_v22 = vadd.f32 1e-12, %v266_v21 }
 0x25c   :  { %v265_v23 = vpop.xlane.xlu1 %264 }
 0x25d   :  { %3061 = vrsqrt.f32 %v268_v22  ;;  %v267_v24 = vmul.f32 0.03125, %v265_v23 }
 0x25f   :  { %v269_v25 = vadd.f32 1e-12, %v267_v24 }
 0x261   :  { %3063 = vrsqrt.f32 %v269_v25 }
 0x267   :  { %v3062_v26 = vpop.eup %3061 }
 0x268   :  { %v272_v28 = vmul.f32 %v3062_v26, %v256_v6 }
 0x26a   :  { %v280_v30 = vmul.f32 %v2627_v27, %v272_v28 }
 0x26b   :  { %v3064_v31 = vpop.eup %3063 }
 0x26c   :  { %v273_v32 = vmul.f32 %v3064_v31, %v257_v10  ;;  %v3789_v33 = vadd.f32 %v2628_v29, %v280_v30 }
 0x26e   :  { %v281_v34 = vmul.f32 %v2627_v27, %v273_v32  ;;  %2781 = vmatprep.mubr.msk.f32.mxu1 %vm246_vm0, %v3789_v33 }
 0x270   :  { %v3793_v35 = vadd.f32 %v2628_v29, %v281_v34 }
 0x272   :  { %2782 = vmatmul.mubr.msk.f32.vlgmr.msra.gmra.mrb[0].mxu1 %vm246_vm0, %v3793_v35 }
 0x273   :  { %2786 = vmatprep.mubr.msk.f32.mxu1 %vm3461_vm1, %v3460_v36 }
 0x345   :  { %v2783_v38 = vpop.f32.mrb[0].mxu1 }
 0x346   :  { %v374_v39 = vpop.f32.mrb[1].mxu1  ;;  %v3809_v41 = vadd.f32 %v2783_v38, %v2629_v37 }
 0x347   :  { %v3803_v40 = vadd.f32 %v2629_v37, %v374_v39 }
 0x349   :  { %557 = vrot.lane.b32.xlu1 %v3803_v40, %s3462_s29  ;;  %384 = vrot.lane.b32.xlu0 %v3803_v40, %s3463_s2 }
 0x34d   :  { %555 = vrot.lane.b32.xlu1 %v3803_v40, %s3464_s30  ;;  %899 = vrot.lane.b32.xlu0 %v3809_v41, %s3462_s29 }
 0x351   :  { %728 = vrot.lane.b32.xlu1 %v3809_v41, %s3463_s2 }
 0x355   :  { %897 = vrot.lane.b32.xlu1 %v3809_v41, %s3464_s30 }
 0x3bb   :  { %v558_v42 = vpop.permute.xlu1 %557  ;;  %v385_v43 = vpop.permute.xlu0 %384 }
 0x3bc   :  { %2785 = vmatpush3.xpose.msk.msra.mxu1 %vm386_vm2, %v385_v43  ;;  %2795 = vmatpush3.xpose.msk.msra.mxu0 %vm386_vm2, %v558_v42 }
 0x3bd   :  { %2804 = vmatprep.subr.mxu0 %v3460_v36  ;;  %2789 = vmatprep.subr.mxu1 %v3460_v36 }
 0x3bf   :  { %v556_v44 = vpop.permute.xlu1 %555  ;;  %2787 = vmatmul.mubr.msk.f32.vlgmr.msra.gmra.mrb[2].mxu1 %vm386_vm2, %v3803_v40  ;;  %v900_v46 = vpop.permute.xlu0 %899 }
 0x3c0   :  { %2797 = vmatmul.mubr.msk.f32.vlgmr.msra.gmra.mrb[0].mxu0 %vm386_vm2, %v556_v44  ;;  %2791 = vmatprep.mubr.msk.f32.mxu1 %vm3461_vm1, %v3460_v36 }
 0x3c1   :  { %2806 = vmatprep.mubr.msk.f32.mxu0 %vm3461_vm1, %v3460_v36 }
 0x3c3   :  { %v729_v45 = vpop.permute.xlu1 %728 }
 0x3c4   :  { %2805 = vmatpush3.xpose.msk.msra.mxu0 %vm386_vm2, %v729_v45 }
 0x3c5   :  { %2814 = vmatprep.subr.mxu0 %v3460_v36 }
 0x3c7   :  { %2807 = vmatmul.mubr.msk.f32.vlgmr.msra.gmra.mrb[2].mxu0 %vm386_vm2, %v3809_v41  ;;  %v898_v47 = vpop.permute.xlu1 %897 }
 0x3c8   :  { %2815 = vmatpush3.xpose.msk.msra.mxu0 %vm386_vm2, %v900_v46  ;;  %2816 = vmatprep.mubr.msk.f32.mxu0 %vm3461_vm1, %v3460_v36 }
 0x3cb   :  { %2817 = vmatmul.mubr.msk.f32.vlgmr.msra.gmra.mrb[4].mxu0 %vm386_vm2, %v898_v47 }
 0x492   :  { %v457_v53 = vpop.f32.mrb[2].mxu1 }
 0x493   :  { %v461_v54 = vmul.f32 0.25, %v457_v53  ;;  %v2788_v55 = vpop.f32.mrb[3].mxu1  ;;  %v629_v56 = vpop.f32.mrb[0].mxu0  ;;  %v1071_v53 = vld [vmem:[%s4210_s14 + $0x10] sm:$0xff] }
 0x494   :  { %v633_v57 = vmul.f32 0.25, %v629_v56  ;;  %v2798_v58 = vpop.f32.mrb[1].mxu0  ;;  %v1072_v55 = vld [vmem:[%s4210_s14 + $0x18] sm:$0xff] }
 0x495   :  { %v466_v59 = vadd.f32 %v3838_v52, %v461_v54  ;;  %v2965_v54 = vpack.c.bf16 %v1070_v51, %v1069_v50  ;;  %v2969_v56 = vpack.c.bf16 %v1072_v55, %v1071_v53  ;;  %v1311_v51 = vld [vmem:[%s4212_s5 + $0x10] sm:$0xff]  ;;  %v1312_v53 = vld [vmem:[%s4212_s5 + $0x18] sm:$0xff]  ;;  %v1313_v55 = vld [vmem:[%s4212_s5 + $0x20] sm:$0xff] }
 0x496   :  { %v634_v61 = vadd.f32 %v633_v57, %v3838_v52 }
 0x497   :  { %v468_v62 = vsel %vm467_vm3, %v466_v59, -inf  ;;  %2966 = vmatprep.subr.bf16.mxu0 %v2965_v54 }
 0x498   :  { %469 = vmax.xlane.f32.xlu0 %v468_v62  ;;  %v635_v63 = vsel %vm467_vm3, %v634_v61, -inf  ;;  %2968 = vmatpush3.bf16.msra.mxu0 %v2965_v54  ;;  %v2985_v54 = vpack.c.bf16 %v1312_v53, %v1311_v51 }
 0x499   :  { %636 = vmax.xlane.f32.xlu1 %v635_v63  ;;  %2970 = vmatprep.subr.bf16.mxu0 %v2969_v56 }
 0x49a   :  { %v800_v1 = vpop.f32.mrb[2].mxu0 }
 0x49b   :  { %v804_v2 = vmul.f32 0.25, %v800_v1  ;;  %v2808_v3 = vpop.f32.mrb[3].mxu0 }
 0x49c   :  { %2972 = vmatpush3.bf16.msra.mxu0 %v2969_v56  ;;  %v1314_v56 = vld [vmem:[%s4212_s5 + $0x28] sm:$0xff] }
 0x49d   :  { %v809_v4 = vadd.f32 %v3844_v0, %v804_v2 }
 0x49e   :  { %v971_v5 = vpop.f32.mrb[4].mxu0 }
 0x49f   :  { %v975_v6 = vmul.f32 0.25, %v971_v5  ;;  %v2818_v7 = vpop.f32.mrb[5].mxu0  ;;  %v810_v8 = vsel %vm467_vm3, %v809_v4, -inf }
 0x4a0   :  { %811 = vmax.xlane.f32.xlu0 %v810_v8 }
 0x4a1   :  { %v976_v9 = vadd.f32 %v975_v6, %v3844_v0  ;;  %v2644_v6 = vld [vmem:[#allocation11] ss:$0 sm:$0xff] }
 0x4a3   :  { %v977_v10 = vsel %vm467_vm3, %v976_v9, -inf }
 0x4a4   :  { %978 = vmax.xlane.f32.xlu0 %v977_v10 }
 0x525   :  { %v470_v11 = vpop.xlane.xlu0 %469 }
 0x526   :  { %v471_v12 = vsub.f32 %v466_v59, %v470_v11  ;;  %v637_v13 = vpop.xlane.xlu1 %636 }
 0x527   :  { %v638_v14 = vsub.f32 %v634_v61, %v637_v13 }
 0x528   :  { %v472_v15 = vmul.f32 1.442695, %v471_v12 }
 0x529   :  { %v639_v16 = vmul.f32 1.442695, %v638_v14 }
 0x52a   :  { %3065 = vpow2.f32 %v472_v15 }
 0x52b   :  { %3067 = vpow2.f32 %v639_v16 }
 0x52d   :  { %v812_v17 = vpop.xlane.xlu0 %811 }
 0x52e   :  { %v813_v18 = vsub.f32 %v809_v4, %v812_v17 }
 0x530   :  { %v814_v19 = vmul.f32 1.442695, %v813_v18 }
 0x531   :  { %v979_v26 = vpop.xlane.xlu0 %978 }
 0x532   :  { %3069 = vpow2.f32 %v814_v19  ;;  %v980_v27 = vsub.f32 %v976_v9, %v979_v26  ;;  %v1209_v26 = vld [vmem:[%s4211_s8 + $0x10] sm:$0xff] }
 0x534   :  { %v3066_v20 = vpop.eup %3065  ;;  %v981_v28 = vmul.f32 1.442695, %v980_v27  ;;  %v1210_v27 = vld [vmem:[%s4211_s8 + $0x18] sm:$0xff] }
 0x535   :  { %v3068_v21 = vpop.eup %3067  ;;  %v474_v22 = vsel %vm467_vm3, %v3066_v20, 0.0 }
 0x536   :  { %475 = vadd.xlane.f32.xlu0 %v474_v22  ;;  %v641_v23 = vsel %vm467_vm3, %v3068_v21, 0.0  ;;  %3071 = vpow2.f32 %v981_v28  ;;  %v2977_v28 = vpack.c.bf16 %v1210_v27, %v1209_v26 }
 0x537   :  { %642 = vadd.xlane.f32.xlu1 %v641_v23 }
 0x53c   :  { %v3070_v24 = vpop.eup %3069 }
 0x53d   :  { %v816_v25 = vsel %vm467_vm3, %v3070_v24, 0.0 }
 0x53e   :  { %817 = vadd.xlane.f32.xlu0 %v816_v25 }
 0x540   :  { %v3072_v29 = vpop.eup %3071 }
 0x541   :  { %v983_v30 = vsel %vm467_vm3, %v3072_v29, 0.0 }
 0x548   :  { %646 = vrot.lane.b32.xlu1 %v3803_v40, %s3465_s10 }
 0x54c   :  { %821 = vrot.lane.b32.xlu1 %v3809_v41, %s3466_s1 }
 0x554   :  { %479 = vrot.lane.b32.xlu0 %v3803_v40, %s3466_s1 }
 0x570   :  { %984 = vadd.xlane.f32.xlu1 %v983_v30 }
 0x581   :  { %988 = vrot.lane.b32.xlu1 %v3809_v41, %s3465_s10 }
 0x5c3   :  { %v476_v31 = vpop.xlane.xlu0 %475 }
 0x5c4   :  { %3073 = vrcp.f32 %v476_v31  ;;  %v643_v32 = vpop.xlane.xlu1 %642 }
 0x5c5   :  { %3075 = vrcp.f32 %v643_v32 }
 0x5c8   :  { %v647_v39 = vpop.permute.xlu1 %646 }
 0x5cb   :  { %v818_v34 = vpop.xlane.xlu0 %817 }
 0x5cc   :  { %3077 = vrcp.f32 %v818_v34  ;;  %v822_v43 = vpop.permute.xlu1 %821 }
 0x5ce   :  { %v3074_v37 = vpop.eup %3073 }
 0x5cf   :  { %v478_v38 = vmul.f32 %v3074_v37, %v3066_v20  ;;  %v480_v40 = vpop.permute.xlu0 %479  ;;  %v3076_v42 = vpop.eup %3075 }
 0x5d0   :  { %2790 = vmatpush3.msra.mxu1 %v480_v40  ;;  %v645_v41 = vmul.f32 %v3076_v42, %v3068_v21  ;;  %v2648_v42 = vld [vmem:[#allocation14] ss:$0 sm:$0xff] }
 0x5d1   :  { %2792 = vmatmul.mubr.msk.f32.vlgmr.msra.gmra.mrb[4].mxu1 %vm467_vm3, %v478_v38  ;;  %2799 = vmatprep.subr.mxu1 %v3460_v36 }
 0x5d2   :  { %2800 = vmatpush3.msra.mxu1 %v647_v39  ;;  %2801 = vmatprep.mubr.msk.f32.mxu1 %vm3461_vm1, %v3460_v36  ;;  %v2647_v39 = vld [vmem:[#allocation13] ss:$0 sm:$0xff] }
 0x5d3   :  { %2809 = vmatprep.subr.mxu1 %v3460_v36 }
 0x5d5   :  { %2802 = vmatmul.mubr.msk.f32.vlgmr.msra.gmra.mrb[6].mxu1 %vm467_vm3, %v645_v41 }
 0x5d6   :  { %v3078_v44 = vpop.eup %3077  ;;  %2810 = vmatpush3.msra.mxu1 %v822_v43  ;;  %2811 = vmatprep.mubr.msk.f32.mxu1 %vm3461_vm1, %v3460_v36 }
 0x5d7   :  { %v820_v45 = vmul.f32 %v3078_v44, %v3070_v24  ;;  %2819 = vmatprep.subr.mxu1 %v3460_v36  ;;  %v1208_v24 = vld [vmem:[%s4211_s8 + $0x8] sm:$0xff] }
 0x5d9   :  { %2812 = vmatmul.mubr.msk.f32.vlgmr.msra.gmra.mrb[8].mxu1 %vm467_vm3, %v820_v45 }
 0x5da   :  { %2821 = vmatprep.mubr.msk.f32.mxu1 %vm3461_vm1, %v3460_v36 }
 0x5fd   :  { %v985_v46 = vpop.xlane.xlu1 %984 }
 0x5fe   :  { %3079 = vrcp.f32 %v985_v46 }
 0x601   :  { %v989_v47 = vpop.permute.xlu1 %988 }
 0x602   :  { %2820 = vmatpush3.msra.mxu1 %v989_v47 }
 0x608   :  { %v3080_v48 = vpop.eup %3079 }
 0x609   :  { %v987_v49 = vmul.f32 %v3080_v48, %v3072_v29  ;;  %v1309_v48 = vld [vmem:[%s4212_s5] sm:$0xff] }
 0x60b   :  { %2822 = vmatmul.mubr.msk.f32.vlgmr.msra.gmra.mrb[10].mxu1 %vm467_vm3, %v987_v49  ;;  %v1310_v49 = vld [vmem:[%s4212_s5 + $0x8] sm:$0xff] }
 0x60c   :  { %v2981_v50 = vpack.c.bf16 %v1310_v49, %v1309_v48 }
 0x60e   :  { %2982 = vmatprep.subr.bf16.mxu0 %v2981_v50 }
 0x6a4   :  { %v551_v57 = vpop.f32.mrb[4].mxu1 }
 0x6a5   :  { %v2793_v58 = vpop.f32.mrb[5].mxu1 }
 0x6a6   :  { %v1315_v58 = vld [vmem:[%s4212_s5 + $0x30] sm:$0xff] }
 0x6a8   :  { %v718_v59 = vpop.f32.mrb[6].mxu1 }
 0x6a9   :  { %723 = vrot.lane.b32.xlu0 %v718_v59, %s3467_s12  ;;  %v2803_v60 = vpop.f32.mrb[7].mxu1  ;;  %v1316_v59 = vld [vmem:[%s4212_s5 + $0x38] sm:$0xff] }
 0x6aa   :  { %v2993_v60 = vpack.c.bf16 %v1316_v59, %v1315_v58 }
 0x6ac   :  { %v893_v61 = vpop.f32.mrb[8].mxu1 }
 0x6ad   :  { %v2813_v62 = vpop.f32.mrb[9].mxu1 }
 0x6de   :  { %v1060_v63 = vpop.f32.mrb[10].mxu1 }
 0x6df   :  { %1065 = vrot.lane.b32.xlu1 %v1060_v63, %s3467_s12  ;;  %v2823_v1 = vpop.f32.mrb[11].mxu1 }
 0x71b   :  { %v724_v2 = vpop.permute.xlu0 %723 }
 0x71c   :  { %v726_v3 = vsel %vm386_vm2, %v551_v57, %v724_v2  ;;  %v2989_v57 = vpack.c.bf16 %v1314_v56, %v1313_v55  ;;  %v2657_v56 = vld [vmem:[#allocation22] ss:$0 sm:$0xff] }
 0x71d   :  { %2832 = vmatprep.mubr.msk.f32.mxu0 %vm246_vm0, %v726_v3 }
 0x751   :  { %v1066_v4 = vpop.permute.xlu1 %1065 }
 0x752   :  { %v1068_v5 = vsel %vm386_vm2, %v893_v61, %v1066_v4  ;;  %v2649_v61 = vld [vmem:[#allocation16] ss:$0 sm:$0xff] }
 0x753   :  { %2833 = vmatmul.mubr.msk.f32.vlgmr.msra.gmra.mrb[6].mxu0 %vm246_vm0, %v1068_v5 }
 0x754   :  { %2984 = vmatpush3.bf16.msra.mxu0 %v2981_v50  ;;  %v2656_v50 = vld [vmem:[#allocation20] ss:$0 sm:$0xff] }
 0x755   :  { %2986 = vmatprep.subr.bf16.mxu0 %v2985_v54 }
 0x758   :  { %2988 = vmatpush3.bf16.msra.mxu0 %v2985_v54 }
 0x759   :  { %2990 = vmatprep.subr.bf16.mxu0 %v2989_v57 }
 0x75c   :  { %2992 = vmatpush3.bf16.msra.mxu0 %v2989_v57 }
 0x75d   :  { %2994 = vmatprep.subr.bf16.mxu0 %v2993_v60 }
 0x760   :  { %2996 = vmatpush3.bf16.msra.mxu0 %v2993_v60 }
 0x761   :  { %2886 = vmatprep.subr.mxu0 %v3460_v36 }
 0x826   :  { %v2834_v7 = vpop.f32.mrb[6].mxu0 }
 0x827   :  { %v1158_v8 = vadd.f32 %v2834_v7, %v2644_v6  ;;  %v1152_v9 = vpop.f32.mrb[7].mxu0 }
 0x828   :  { %v1153_v10 = vadd.f32 %v2644_v6, %v1152_v9 }
 0x829   :  { %v1162_v11 = vadd.f32 %v1158_v8, %v3793_v35 }
 0x82a   :  { %v1161_v12 = vadd.f32 %v1153_v10, %v3789_v33  ;;  %v1207_v33 = vld [vmem:[%s4211_s8] sm:$0xff] }
 0x82b   :  { %v1168_v13 = vsel %vm246_vm0, %v1162_v11, 0.0  ;;  %v2973_v25 = vpack.c.bf16 %v1208_v24, %v1207_v33 }
 0x82c   :  { %1169 = vadd.xlane.f32.xlu1 %v1168_v13  ;;  %v1165_v14 = vsel %vm246_vm0, %v1161_v12, 0.0  ;;  %v2652_v13 = vld [vmem:[#allocation17] ss:$0 sm:$0xff] }
 0x82d   :  { %1166 = vadd.xlane.f32.xlu0 %v1165_v14  ;;  %2974 = vmatprep.subr.bf16.mxu1 %v2973_v25 }
 0x82e   :  { %2976 = vmatpush3.bf16.msra.mxu1 %v2973_v25 }
 0x82f   :  { %2978 = vmatprep.subr.bf16.mxu1 %v2977_v28 }
 0x832   :  { %2980 = vmatpush3.bf16.msra.mxu1 %v2977_v28 }
 0x8b9   :  { %v1170_v15 = vpop.xlane.xlu1 %1169 }
 0x8ba   :  { %v1172_v16 = vmul.f32 0.03125, %v1170_v15  ;;  %v1167_v17 = vpop.xlane.xlu0 %1166 }
 0x8bb   :  { %v1171_v18 = vmul.f32 0.03125, %v1167_v17 }
 0x8bc   :  { %v1174_v19 = vsub.f32 %v1162_v11, %v1172_v16 }
 0x8bd   :  { %v1173_v20 = vsub.f32 %v1161_v12, %v1171_v18 }
 0x8be   :  { %v1176_v23 = vmul.f32 %v1174_v19, %v1174_v19 }
 0x8bf   :  { %v1175_v21 = vmul.f32 %v1173_v20, %v1173_v20 }
 0x8c0   :  { %v1180_v35 = vsel %vm246_vm0, %v1176_v23, 0.0 }
 0x8c1   :  { %v1177_v22 = vsel %vm246_vm0, %v1175_v21, 0.0 }
 0x8c2   :  { %1178 = vadd.xlane.f32.xlu0 %v1177_v22 }
 0x8c6   :  { %1181 = vadd.xlane.f32.xlu0 %v1180_v35 }
 0x94f   :  { %v1179_v29 = vpop.xlane.xlu0 %1178 }
 0x950   :  { %v1183_v30 = vmul.f32 0.03125, %v1179_v29 }
 0x952   :  { %v1185_v31 = vadd.f32 1e-12, %v1183_v30  ;;  %v1452_v30 = vld [vmem:[%s4159_s16] sm:$0xff] }
 0x953   :  { %v1182_v32 = vpop.xlane.xlu0 %1181 }
 0x954   :  { %3081 = vrsqrt.f32 %v1185_v31  ;;  %v1184_v34 = vmul.f32 0.03125, %v1182_v32  ;;  %v1453_v31 = vld [vmem:[%s4159_s16 + $0x8] sm:$0xff] }
 0x955   :  { %v2997_v32 = vpack.c.bf16 %v1453_v31, %v1452_v30 }
 0x956   :  { %v1186_v37 = vadd.f32 1e-12, %v1184_v34  ;;  %v1454_v34 = vld [vmem:[%s4159_s16 + $0x10] sm:$0xff] }
 0x957   :  { %2998 = vmatprep.subr.bf16.mxu1 %v2997_v32 }
 0x958   :  { %3083 = vrsqrt.f32 %v1186_v37  ;;  %v1455_v37 = vld [vmem:[%s4159_s16 + $0x18] sm:$0xff]  ;;  %s3407_s16 = scalar_lea.vmem %s2610_s9, 256 }
 0x959   :  { %p3408_p6 = scmp.ne.s32.totalorder %s2610_s9, %s3407_s16  ;;  %p3413_p8 = scmp.lt.s32.totalorder %s3407_s16, %s3407_s16 }
 0x95b   :  { %p3414_p9 = por %p3413_p8, %p3412_p7 }
 0x95d   :  { %p3415_p10 = pnand %p3414_p9, %p3408_p6 }
 0x95e   :  { %v3082_v38 = vpop.eup %3081 }
 0x95f   :  { %v1189_v40 = vmul.f32 %v3082_v38, %v1173_v20  ;;  %v3001_v38 = vpack.c.bf16 %v1455_v37, %v1454_v34 }
 0x961   :  { %v1197_v41 = vmul.f32 %v2647_v39, %v1189_v40 }
 0x962   :  { %v3084_v43 = vpop.eup %3083 }
 0x963   :  { %v1190_v44 = vmul.f32 %v3084_v43, %v1174_v19  ;;  %v1205_v45 = vadd.f32 %v2648_v42, %v1197_v41 }
 0x965   :  { %v1198_v46 = vmul.f32 %v2647_v39, %v1190_v44  ;;  %2843 = vmatprep.mubr.msk.f32.mxu1 %vm246_vm0, %v1205_v45 }
 0x967   :  { %v1206_v47 = vadd.f32 %v2648_v42, %v1198_v46  ;;  %v2655_v46 = vld [vmem:[#allocation19] ss:$0 sm:$0xff] }
 0x969   :  { %2844 = vmatmul.mubr.msk.f32.vlgmr.msra.gmra.mrb[12].mxu1 %vm246_vm0, %v1206_v47 }
 0x96a   :  { %3000 = vmatpush3.bf16.msra.mxu1 %v2997_v32 }
 0x96b   :  { %3002 = vmatprep.subr.bf16.mxu1 %v3001_v38 }
 0x96e   :  { %3004 = vmatpush3.bf16.msra.mxu1 %v3001_v38 }
 0x96f   :  { %2876 = vmatprep.subr.mxu1 %v3460_v36 }
 0xa3c   :  { %v2845_v62 = vpop.f32.mrb[12].mxu1 }
 0xa3d   :  { %v1296_v63 = vadd.f32 %v2845_v62, %v2649_v61  ;;  %v1290_v1 = vpop.f32.mrb[13].mxu1 }
 0xa3e   :  { %v1291_v2 = vadd.f32 %v2649_v61, %v1290_v1 }
 0xa3f   :  { %v1302_v3 = vmul.f32 0.70710677, %v1296_v63  ;;  %v1300_v10 = vmul.f32 0.5, %v1296_v63 }
 0xa40   :  { %v1301_v4 = vmul.f32 0.70710677, %v1291_v2  ;;  %v1299_v8 = vmul.f32 0.5, %v1291_v2 }
 0xa41   :  { %3085 = verf.f32 %v1302_v3 }
 0xa42   :  { %3087 = verf.f32 %v1301_v4 }
 0xa4b   :  { %v3086_v5 = vpop.eup %3085 }
 0xa4c   :  { %v3088_v6 = vpop.eup %3087  ;;  %v1306_v7 = vadd.f32 1.0, %v3086_v5 }
 0xa4d   :  { %v1305_v9 = vadd.f32 1.0, %v3088_v6 }
 0xa4e   :  { %v1308_v12 = vmul.f32 %v1306_v7, %v1300_v10 }
 0xa4f   :  { %v1307_v11 = vmul.f32 %v1305_v9, %v1299_v8 }
 0xa51   :  { %2862 = vmatprep.mubr.msk.f32.mxu0 %vm1324_vm4, %v1307_v11 }
 0xa52   :  { %2863 = vmatmul.mubr.msk.f32.vlgmr.msra.gmra.mrb[8].mxu0 %vm1324_vm4, %v1308_v12 }
 0xa53   :  { %2888 = vmatprep.mubr.msk.f32.mxu0 %vm3461_vm1, %v3460_v36 }
 0xb25   :  { %v2864_v14 = vpop.f32.mrb[8].mxu0 }
 0xb26   :  { %v1403_v15 = vadd.f32 %v2864_v14, %v2652_v13  ;;  %v1397_v16 = vpop.f32.mrb[9].mxu0 }
 0xb27   :  { %v1398_v17 = vadd.f32 %v2652_v13, %v1397_v16 }
 0xb28   :  { %v1407_v18 = vadd.f32 %v1403_v15, %v1206_v47 }
 0xb29   :  { %v1406_v19 = vadd.f32 %v1398_v17, %v1205_v45 }
 0xb2a   :  { %v1413_v20 = vsel %vm246_vm0, %v1407_v18, 0.0 }
 0xb2b   :  { %1414 = vadd.xlane.f32.xlu1 %v1413_v20  ;;  %v1410_v21 = vsel %vm246_vm0, %v1406_v19, 0.0 }
 0xb2c   :  { %1411 = vadd.xlane.f32.xlu0 %v1410_v21 }
 0xbb8   :  { %v1415_v22 = vpop.xlane.xlu1 %1414 }
 0xbb9   :  { %v1417_v23 = vmul.f32 0.03125, %v1415_v22  ;;  %v1412_v35 = vpop.xlane.xlu0 %1411 }
 0xbba   :  { %v1416_v33 = vmul.f32 0.03125, %v1412_v35 }
 0xbbb   :  { %v1419_v24 = vsub.f32 %v1407_v18, %v1417_v23 }
 0xbbc   :  { %v1418_v25 = vsub.f32 %v1406_v19, %v1416_v33 }
 0xbbd   :  { %v1421_v26 = vmul.f32 %v1419_v24, %v1419_v24 }
 0xbbe   :  { %v1420_v27 = vmul.f32 %v1418_v25, %v1418_v25 }
 0xbbf   :  { %v1425_v28 = vsel %vm246_vm0, %v1421_v26, 0.0 }
 0xbc0   :  { %1426 = vadd.xlane.f32.xlu1 %v1425_v28  ;;  %v1422_v29 = vsel %vm246_vm0, %v1420_v27, 0.0 }
 0xbc1   :  { %1423 = vadd.xlane.f32.xlu0 %v1422_v29 }
 0xc4d   :  { %v1427_v39 = vpop.xlane.xlu1 %1426 }
 0xc4e   :  { %v1429_v40 = vmul.f32 0.03125, %v1427_v39  ;;  %v1424_v42 = vpop.xlane.xlu0 %1423 }
 0xc4f   :  { %v1428_v41 = vmul.f32 0.03125, %v1424_v42 }
 0xc50   :  { %v1431_v43 = vadd.f32 1e-12, %v1429_v40 }
 0xc51   :  { %v1430_v44 = vadd.f32 1e-12, %v1428_v41 }
 0xc52   :  { %3089 = vrsqrt.f32 %v1431_v43 }
 0xc53   :  { %3091 = vrsqrt.f32 %v1430_v44 }
 0xc5c   :  { %v3090_v45 = vpop.eup %3089 }
 0xc5d   :  { %v3092_v47 = vpop.eup %3091  ;;  %v1435_v48 = vmul.f32 %v3090_v45, %v1419_v24 }
 0xc5e   :  { %v1434_v49 = vmul.f32 %v3092_v47, %v1418_v25 }
 0xc5f   :  { %v1443_v51 = vmul.f32 %v2655_v46, %v1435_v48 }
 0xc60   :  { %v1442_v53 = vmul.f32 %v2655_v46, %v1434_v49 }
 0xc61   :  { %v3961_v55 = vadd.f32 %v2656_v50, %v1443_v51 }
 0xc62   :  { %v3959_v54 = vadd.f32 %v2656_v50, %v1442_v53 }
 0xc64   :  { %2873 = vmatprep.mubr.msk.f32.mxu1 %vm246_vm0, %v3959_v54 }
 0xc65   :  { %2874 = vmatmul.mubr.msk.f32.vlgmr.msra.gmra.mrb[14].mxu1 %vm246_vm0, %v3961_v55 }
 0xc66   :  { %2878 = vmatprep.mubr.msk.f32.mxu1 %vm3461_vm1, %v3460_v36 }
 0xd38   :  { %v2875_v57 = vpop.f32.mrb[14].mxu1 }
 0xd39   :  { %v1535_v58 = vpop.f32.mrb[15].mxu1  ;;  %v3975_v60 = vadd.f32 %v2875_v57, %v2657_v56 }
 0xd3a   :  { %v3969_v59 = vadd.f32 %v2657_v56, %v1535_v58 }
 0xd3c   :  { %1712 = vrot.lane.b32.xlu1 %v3969_v59, %s3462_s29  ;;  %1545 = vrot.lane.b32.xlu0 %v3969_v59, %s3463_s2 }
 0xd40   :  { %1710 = vrot.lane.b32.xlu1 %v3969_v59, %s3464_s30  ;;  %2050 = vrot.lane.b32.xlu0 %v3975_v60, %s3462_s29 }
 0xd44   :  { %1883 = vrot.lane.b32.xlu1 %v3975_v60, %s3463_s2 }
 0xd48   :  { %2048 = vrot.lane.b32.xlu1 %v3975_v60, %s3464_s30 }
 0xdae   :  { %v1713_v61 = vpop.permute.xlu1 %1712  ;;  %v1546_v62 = vpop.permute.xlu0 %1545 }
 0xdaf   :  { %2877 = vmatpush3.xpose.msk.msra.mxu1 %vm386_vm2, %v1546_v62  ;;  %2887 = vmatpush3.xpose.msk.msra.mxu0 %vm386_vm2, %v1713_v61  ;;  %v2220_v62 = vld [vmem:[%s4161_s18] sm:$0xff] }
 0xdb0   :  { %2896 = vmatprep.subr.mxu0 %v3460_v36  ;;  %2881 = vmatprep.subr.mxu1 %v3460_v36 }
 0xdb2   :  { %v1711_v63 = vpop.permute.xlu1 %1710  ;;  %2879 = vmatmul.mubr.msk.f32.vlgmr.msra.gmra.mrb[16].mxu1 %vm386_vm2, %v3969_v59  ;;  %v2051_v2 = vpop.permute.xlu0 %2050 }
 0xdb3   :  { %2889 = vmatmul.mubr.msk.f32.vlgmr.msra.gmra.mrb[10].mxu0 %vm386_vm2, %v1711_v63  ;;  %2883 = vmatprep.mubr.msk.f32.mxu1 %vm3461_vm1, %v3460_v36  ;;  %v2221_v63 = vld [vmem:[%s4161_s18 + $0x8] sm:$0xff] }
 0xdb4   :  { %2898 = vmatprep.mubr.msk.f32.mxu0 %vm3461_vm1, %v3460_v36 }
 0xdb6   :  { %v1884_v1 = vpop.permute.xlu1 %1883 }
 0xdb7   :  { %2897 = vmatpush3.xpose.msk.msra.mxu0 %vm386_vm2, %v1884_v1  ;;  %v3005_v1 = vpack.c.bf16 %v2221_v63, %v2220_v62  ;;  %v2464_v63 = vld [vmem:[%s4167_s24 + $0x20] sm:$0xff] }
 0xdb8   :  { %2906 = vmatprep.subr.mxu0 %v3460_v36 }
 0xdba   :  { %2899 = vmatmul.mubr.msk.f32.vlgmr.msra.gmra.mrb[12].mxu0 %vm386_vm2, %v3975_v60  ;;  %v2049_v3 = vpop.permute.xlu1 %2048 }
 0xdbb   :  { %2907 = vmatpush3.xpose.msk.msra.mxu0 %vm386_vm2, %v2051_v2  ;;  %2908 = vmatprep.mubr.msk.f32.mxu0 %vm3461_vm1, %v3460_v36  ;;  %v2223_v2 = vld [vmem:[%s4161_s18 + $0x18] sm:$0xff] }
 0xdbc   :  { %3006 = vmatprep.subr.bf16.mxu0 %v3005_v1 }
 0xdbe   :  { %2909 = vmatmul.mubr.msk.f32.vlgmr.msra.gmra.mrb[14].mxu0 %vm386_vm2, %v2049_v3 }
 0xdbf   :  { %3008 = vmatpush3.bf16.msra.mxu0 %v3005_v1 }
 0xe85   :  { %v1617_v4 = vpop.f32.mrb[16].mxu1 }
 0xe86   :  { %v1621_v5 = vmul.f32 0.25, %v1617_v4  ;;  %v2880_v6 = vpop.f32.mrb[17].mxu1  ;;  %v1784_v7 = vpop.f32.mrb[10].mxu0 }
 0xe87   :  { %v1788_v8 = vmul.f32 0.25, %v1784_v7  ;;  %v2890_v9 = vpop.f32.mrb[11].mxu0 }
 0xe88   :  { %v1622_v10 = vadd.f32 %v1621_v5, %v3838_v52 }
 0xe89   :  { %v1789_v11 = vadd.f32 %v1788_v8, %v3838_v52 }
 0xe8a   :  { %v1623_v12 = vsel %vm467_vm3, %v1622_v10, -inf }
 0xe8b   :  { %1624 = vmax.xlane.f32.xlu0 %v1623_v12  ;;  %v1790_v13 = vsel %vm467_vm3, %v1789_v11, -inf }
 0xe8c   :  { %1791 = vmax.xlane.f32.xlu1 %v1790_v13 }
 0xe8d   :  { %v1955_v14 = vpop.f32.mrb[12].mxu0 }
 0xe8e   :  { %v1959_v15 = vmul.f32 0.25, %v1955_v14  ;;  %v2900_v16 = vpop.f32.mrb[13].mxu0 }
 0xe8f   :  { %v2672_v16 = vld [vmem:[%s4162_s19] ss:$0 sm:$0xff] }
 0xe90   :  { %v1960_v17 = vadd.f32 %v1959_v15, %v3844_v0 }
 0xe91   :  { %v2122_v18 = vpop.f32.mrb[14].mxu0 }
 0xe92   :  { %v2126_v19 = vmul.f32 0.25, %v2122_v18  ;;  %v2910_v20 = vpop.f32.mrb[15].mxu0  ;;  %v1961_v21 = vsel %vm467_vm3, %v1960_v17, -inf }
 0xe93   :  { %1962 = vmax.xlane.f32.xlu0 %v1961_v21 }
 0xe94   :  { %v2127_v22 = vadd.f32 %v2126_v19, %v3844_v0 }
 0xe96   :  { %v2128_v52 = vsel %vm467_vm3, %v2127_v22, -inf }
 0xe97   :  { %2129 = vmax.xlane.f32.xlu0 %v2128_v52 }
 0xf18   :  { %v1625_v23 = vpop.xlane.xlu0 %1624 }
 0xf19   :  { %v1626_v35 = vsub.f32 %v1622_v10, %v1625_v23  ;;  %v1792_v33 = vpop.xlane.xlu1 %1791 }
 0xf1a   :  { %v1793_v24 = vsub.f32 %v1789_v11, %v1792_v33 }
 0xf1b   :  { %v1627_v25 = vmul.f32 1.442695, %v1626_v35 }
 0xf1c   :  { %v1794_v26 = vmul.f32 1.442695, %v1793_v24 }
 0xf1d   :  { %3093 = vpow2.f32 %v1627_v25 }
 0xf1e   :  { %3095 = vpow2.f32 %v1794_v26 }
 0xf20   :  { %v1963_v27 = vpop.xlane.xlu0 %1962 }
 0xf21   :  { %v1964_v28 = vsub.f32 %v1960_v17, %v1963_v27 }
 0xf23   :  { %v1965_v29 = vmul.f32 1.442695, %v1964_v28 }
 0xf24   :  { %v2130_v38 = vpop.xlane.xlu0 %2129 }
 0xf25   :  { %3097 = vpow2.f32 %v1965_v29  ;;  %v2131_v39 = vsub.f32 %v2127_v22, %v2130_v38 }
 0xf27   :  { %v3094_v30 = vpop.eup %3093  ;;  %v2132_v40 = vmul.f32 1.442695, %v2131_v39 }
 0xf28   :  { %v3096_v31 = vpop.eup %3095  ;;  %v1629_v32 = vsel %vm467_vm3, %v3094_v30, 0.0 }
 0xf29   :  { %1630 = vadd.xlane.f32.xlu0 %v1629_v32  ;;  %v1796_v0 = vsel %vm467_vm3, %v3096_v31, 0.0  ;;  %3099 = vpow2.f32 %v2132_v40 }
 0xf2a   :  { %1797 = vadd.xlane.f32.xlu1 %v1796_v0  ;;  %v2360_v0 = vld [vmem:[%s4165_s22 + $0x10] sm:$0xff] }
 0xf2f   :  { %v3098_v34 = vpop.eup %3097 }
 0xf30   :  { %v1967_v37 = vsel %vm467_vm3, %v3098_v34, 0.0 }
 0xf31   :  { %1968 = vadd.xlane.f32.xlu0 %v1967_v37 }
 0xf33   :  { %v3100_v42 = vpop.eup %3099 }
 0xf34   :  { %v2134_v41 = vsel %vm467_vm3, %v3100_v42, 0.0 }
 0xf3b   :  { %1801 = vrot.lane.b32.xlu1 %v3969_v59, %s3465_s10 }
 0xf3f   :  { %1972 = vrot.lane.b32.xlu1 %v3975_v60, %s3466_s1 }
 0xf47   :  { %1634 = vrot.lane.b32.xlu0 %v3969_v59, %s3466_s1 }
 0xf63   :  { %2135 = vadd.xlane.f32.xlu1 %v2134_v41 }
 0xf74   :  { %2139 = vrot.lane.b32.xlu1 %v3975_v60, %s3465_s10 }
 0xfb6   :  { %v1631_v43 = vpop.xlane.xlu0 %1630 }
 0xfb7   :  { %3101 = vrcp.f32 %v1631_v43  ;;  %v1798_v44 = vpop.xlane.xlu1 %1797 }
 0xfb8   :  { %3103 = vrcp.f32 %v1798_v44 }
 0xfbb   :  { %v1802_v48 = vpop.permute.xlu1 %1801 }
 0xfbe   :  { %v1969_v45 = vpop.xlane.xlu0 %1968 }
 0xfbf   :  { %3105 = vrcp.f32 %v1969_v45  ;;  %v1973_v53 = vpop.permute.xlu1 %1972  ;;  %v2675_v45 = vld [vmem:[%s4163_s20] ss:$0 sm:$0xff] }
 0xfc1   :  { %v3102_v46 = vpop.eup %3101 }
 0xfc2   :  { %v1633_v47 = vmul.f32 %v3102_v46, %v3094_v30  ;;  %v1635_v49 = vpop.permute.xlu0 %1634  ;;  %v3104_v50 = vpop.eup %3103 }
 0xfc3   :  { %2882 = vmatpush3.msra.mxu1 %v1635_v49  ;;  %v1800_v51 = vmul.f32 %v3104_v50, %v3096_v31  ;;  %v2359_v31 = vld [vmem:[%s4165_s22 + $0x8] sm:$0xff] }
 0xfc4   :  { %2884 = vmatmul.mubr.msk.f32.vlgmr.msra.gmra.mrb[18].mxu1 %vm467_vm3, %v1633_v47  ;;  %2891 = vmatprep.subr.mxu1 %v3460_v36  ;;  %v2676_v47 = vld [vmem:[%s4164_s21] ss:$0 sm:$0xff] }
 0xfc5   :  { %2892 = vmatpush3.msra.mxu1 %v1802_v48  ;;  %2893 = vmatprep.mubr.msk.f32.mxu1 %vm3461_vm1, %v3460_v36 }
 0xfc6   :  { %2901 = vmatprep.subr.mxu1 %v3460_v36 }
 0xfc8   :  { %2894 = vmatmul.mubr.msk.f32.vlgmr.msra.gmra.mrb[20].mxu1 %vm467_vm3, %v1800_v51 }
 0xfc9   :  { %v3106_v56 = vpop.eup %3105  ;;  %2902 = vmatpush3.msra.mxu1 %v1973_v53  ;;  %2903 = vmatprep.mubr.msk.f32.mxu1 %vm3461_vm1, %v3460_v36 }
 0xfca   :  { %v1971_v57 = vmul.f32 %v3106_v56, %v3098_v34  ;;  %2911 = vmatprep.subr.mxu1 %v3460_v36  ;;  %v2361_v34 = vld [vmem:[%s4165_s22 + $0x18] sm:$0xff] }
 0xfcb   :  { %v3017_v37 = vpack.c.bf16 %v2361_v34, %v2360_v0 }
 0xfcc   :  { %2904 = vmatmul.mubr.msk.f32.vlgmr.msra.gmra.mrb[22].mxu1 %vm467_vm3, %v1971_v57  ;;  %v2460_v57 = vld [vmem:[%s4167_s24] sm:$0xff] }
 0xfcd   :  { %2913 = vmatprep.mubr.msk.f32.mxu1 %vm3461_vm1, %v3460_v36  ;;  %v2222_v36 = vld [vmem:[%s4161_s18 + $0x10] sm:$0xff] }
 0xfce   :  { %v3009_v3 = vpack.c.bf16 %v2223_v2, %v2222_v36  ;;  %v2465_v36 = vld [vmem:[%s4167_s24 + $0x28] sm:$0xff]  ;;  %v2466_v2 = vld [vmem:[%s4167_s24 + $0x30] sm:$0xff] }
 0xfcf   :  { %v3029_v1 = vpack.c.bf16 %v2465_v36, %v2464_v63 }
 0xfd0   :  { %3010 = vmatprep.subr.bf16.mxu0 %v3009_v3 }
 0xfd1   :  { %3012 = vmatpush3.bf16.msra.mxu0 %v3009_v3  ;;  %v2467_v3 = vld [vmem:[%s4167_s24 + $0x38] sm:$0xff] }
 0xff0   :  { %v2136_v58 = vpop.xlane.xlu1 %2135 }
 0xff1   :  { %3107 = vrcp.f32 %v2136_v58  ;;  %v2461_v58 = vld [vmem:[%s4167_s24 + $0x8] sm:$0xff] }
 0xff4   :  { %v2140_v59 = vpop.permute.xlu1 %2139 }
 0xff5   :  { %2912 = vmatpush3.msra.mxu1 %v2140_v59  ;;  %v3021_v59 = vpack.c.bf16 %v2461_v58, %v2460_v57 }
 0xff7   :  { %3022 = vmatprep.subr.bf16.mxu0 %v3021_v59 }
 0xffb   :  { %v3108_v60 = vpop.eup %3107 }
 0xffc   :  { %v2138_v61 = vmul.f32 %v3108_v60, %v3100_v42  ;;  %v2462_v60 = vld [vmem:[%s4167_s24 + $0x10] sm:$0xff] }
 0xffe   :  { %2914 = vmatmul.mubr.msk.f32.vlgmr.msra.gmra.mrb[24].mxu1 %vm467_vm3, %v2138_v61  ;;  %v2463_v61 = vld [vmem:[%s4167_s24 + $0x18] sm:$0xff] }
 0xfff   :  { %v3025_v62 = vpack.c.bf16 %v2463_v61, %v2462_v60 }
0x1097   :  { %v1706_v4 = vpop.f32.mrb[18].mxu1 }
0x1098   :  { %v2885_v5 = vpop.f32.mrb[19].mxu1 }
0x1099   :  { %v2677_v5 = vld [vmem:[%s4166_s23] ss:$0 sm:$0xff] }
0x109b   :  { %v1873_v6 = vpop.f32.mrb[20].mxu1 }
0x109c   :  { %1878 = vrot.lane.b32.xlu0 %v1873_v6, %s3467_s12  ;;  %v2895_v7 = vpop.f32.mrb[21].mxu1 }
0x109f   :  { %v2044_v8 = vpop.f32.mrb[22].mxu1 }
0x10a0   :  { %v2905_v9 = vpop.f32.mrb[23].mxu1 }
0x10d1   :  { %v2211_v10 = vpop.f32.mrb[24].mxu1 }
0x10d2   :  { %2216 = vrot.lane.b32.xlu1 %v2211_v10, %s3467_s12  ;;  %v2915_v11 = vpop.f32.mrb[25].mxu1 }
0x110e   :  { %v1879_v12 = vpop.permute.xlu0 %1878 }
0x110f   :  { %v1881_v13 = vsel %vm386_vm2, %v1706_v4, %v1879_v12  ;;  %v3033_v4 = vpack.c.bf16 %v2467_v3, %v2466_v2 }
0x1110   :  { %2924 = vmatprep.mubr.msk.f32.mxu0 %vm246_vm0, %v1881_v13 }
0x1144   :  { %v2217_v14 = vpop.permute.xlu1 %2216 }
0x1145   :  { %v2219_v15 = vsel %vm386_vm2, %v2044_v8, %v2217_v14 }
0x1146   :  { %2925 = vmatmul.mubr.msk.f32.vlgmr.msra.gmra.mrb[16].mxu0 %vm246_vm0, %v2219_v15 }
0x1147   :  { %3024 = vmatpush3.bf16.msra.mxu0 %v3021_v59 }
0x1148   :  { %3026 = vmatprep.subr.bf16.mxu0 %v3025_v62 }
0x114b   :  { %3028 = vmatpush3.bf16.msra.mxu0 %v3025_v62 }
0x114c   :  { %3030 = vmatprep.subr.bf16.mxu0 %v3029_v1 }
0x114f   :  { %3032 = vmatpush3.bf16.msra.mxu0 %v3029_v1 }
0x1150   :  { %3034 = vmatprep.subr.bf16.mxu0 %v3033_v4 }
0x1153   :  { %3036 = vmatpush3.bf16.msra.mxu0 %v3033_v4 }
0x1219   :  { %v2926_v17 = vpop.f32.mrb[16].mxu0 }
0x121a   :  { %v2309_v18 = vadd.f32 %v2926_v17, %v2672_v16  ;;  %v2303_v19 = vpop.f32.mrb[17].mxu0 }
0x121b   :  { %v2304_v20 = vadd.f32 %v2672_v16, %v2303_v19 }
0x121c   :  { %v2313_v21 = vadd.f32 %v2309_v18, %v3961_v55 }
0x121d   :  { %v2312_v22 = vadd.f32 %v2304_v20, %v3959_v54  ;;  %v2358_v54 = vld [vmem:[%s4165_s22] sm:$0xff] }
0x121e   :  { %v2319_v52 = vsel %vm246_vm0, %v2313_v21, 0.0  ;;  %v3013_v32 = vpack.c.bf16 %v2359_v31, %v2358_v54  ;;  %v2680_v20 = vld [vmem:[%s4168_s25] ss:$0 sm:$0xff] }
0x121f   :  { %2320 = vadd.xlane.f32.xlu1 %v2319_v52  ;;  %v2316_v23 = vsel %vm246_vm0, %v2312_v22, 0.0 }
0x1220   :  { %2317 = vadd.xlane.f32.xlu0 %v2316_v23  ;;  %3014 = vmatprep.subr.bf16.mxu1 %v3013_v32 }
0x1221   :  { %3016 = vmatpush3.bf16.msra.mxu1 %v3013_v32 }
0x1222   :  { %3018 = vmatprep.subr.bf16.mxu1 %v3017_v37 }
0x1225   :  { %3020 = vmatpush3.bf16.msra.mxu1 %v3017_v37 }
0x12ac   :  { %v2321_v35 = vpop.xlane.xlu1 %2320 }
0x12ad   :  { %v2323_v33 = vmul.f32 0.03125, %v2321_v35  ;;  %v2318_v24 = vpop.xlane.xlu0 %2317 }
0x12ae   :  { %v2322_v25 = vmul.f32 0.03125, %v2318_v24 }
0x12af   :  { %v2325_v26 = vsub.f32 %v2313_v21, %v2323_v33 }
0x12b0   :  { %v2324_v27 = vsub.f32 %v2312_v22, %v2322_v25 }
0x12b1   :  { %v2327_v30 = vmul.f32 %v2325_v26, %v2325_v26 }
0x12b2   :  { %v2326_v28 = vmul.f32 %v2324_v27, %v2324_v27 }
0x12b3   :  { %v2331_v55 = vsel %vm246_vm0, %v2327_v30, 0.0 }
0x12b4   :  { %v2328_v29 = vsel %vm246_vm0, %v2326_v28, 0.0 }
0x12b5   :  { %2329 = vadd.xlane.f32.xlu0 %v2328_v29 }
0x12b9   :  { %2332 = vadd.xlane.f32.xlu0 %v2331_v55 }
0x1342   :  { %v2330_v38 = vpop.xlane.xlu0 %2329 }
0x1343   :  { %v2334_v39 = vmul.f32 0.03125, %v2330_v38 }
0x1345   :  { %v2336_v40 = vadd.f32 1e-12, %v2334_v39 }
0x1346   :  { %v2333_v42 = vpop.xlane.xlu0 %2332 }
0x1347   :  { %3109 = vrsqrt.f32 %v2336_v40  ;;  %v2335_v41 = vmul.f32 0.03125, %v2333_v42 }
0x1349   :  { %v2337_v43 = vadd.f32 1e-12, %v2335_v41 }
0x134b   :  { %3111 = vrsqrt.f32 %v2337_v43  ;;  %v2683_v43 = vld [vmem:[%s4169_s26] ss:$0 sm:$0xff] }
0x1351   :  { %v3110_v44 = vpop.eup %3109 }
0x1352   :  { %v2340_v46 = vmul.f32 %v3110_v44, %v2324_v27 }
0x1354   :  { %v2348_v48 = vmul.f32 %v2675_v45, %v2340_v46 }
0x1355   :  { %v3112_v49 = vpop.eup %3111 }
0x1356   :  { %v2341_v50 = vmul.f32 %v3112_v49, %v2325_v26  ;;  %v2356_v51 = vadd.f32 %v2676_v47, %v2348_v48 }
0x1358   :  { %v2349_v53 = vmul.f32 %v2675_v45, %v2341_v50  ;;  %2935 = vmatprep.mubr.msk.f32.mxu1 %vm246_vm0, %v2356_v51 }
0x135a   :  { %v2357_v56 = vadd.f32 %v2676_v47, %v2349_v53  ;;  %v2684_v47 = vld [vmem:[%s4170_s27] ss:$0 sm:$0xff] }
0x135c   :  { %2936 = vmatmul.mubr.msk.f32.vlgmr.msra.gmra.mrb[26].mxu1 %vm246_vm0, %v2357_v56 }
0x142f   :  { %v2937_v6 = vpop.f32.mrb[26].mxu1 }
0x1430   :  { %v2447_v7 = vadd.f32 %v2937_v6, %v2677_v5  ;;  %v2441_v8 = vpop.f32.mrb[27].mxu1 }
0x1431   :  { %v2442_v9 = vadd.f32 %v2677_v5, %v2441_v8 }
0x1432   :  { %v2453_v10 = vmul.f32 0.70710677, %v2447_v7  ;;  %v2451_v17 = vmul.f32 0.5, %v2447_v7 }
0x1433   :  { %v2452_v11 = vmul.f32 0.70710677, %v2442_v9  ;;  %v2450_v15 = vmul.f32 0.5, %v2442_v9 }
0x1434   :  { %3113 = verf.f32 %v2453_v10 }
0x1435   :  { %3115 = verf.f32 %v2452_v11 }
0x143e   :  { %v3114_v12 = vpop.eup %3113 }
0x143f   :  { %v3116_v13 = vpop.eup %3115  ;;  %v2457_v14 = vadd.f32 1.0, %v3114_v12 }
0x1440   :  { %v2456_v16 = vadd.f32 1.0, %v3116_v13 }
0x1441   :  { %v2459_v19 = vmul.f32 %v2457_v14, %v2451_v17 }
0x1442   :  { %v2458_v18 = vmul.f32 %v2456_v16, %v2450_v15 }
0x1444   :  { %2954 = vmatprep.mubr.msk.f32.mxu0 %vm1324_vm4, %v2458_v18 }
0x1445   :  { %2955 = vmatmul.mubr.msk.f32.vlgmr.msra.gmra.mrb[18].mxu0 %vm1324_vm4, %v2459_v19 }
0x1518   :  { %v2956_v21 = vpop.f32.mrb[18].mxu0 }
0x1519   :  { %v2553_v22 = vadd.f32 %v2956_v21, %v2680_v20  ;;  %v2547_v52 = vpop.f32.mrb[19].mxu0 }
0x151a   :  { %v2548_v23 = vadd.f32 %v2680_v20, %v2547_v52 }
0x151b   :  { %v2557_v35 = vadd.f32 %v2553_v22, %v2357_v56 }
0x151c   :  { %v2556_v33 = vadd.f32 %v2548_v23, %v2356_v51 }
0x151d   :  { %v2563_v24 = vsel %vm246_vm0, %v2557_v35, 0.0 }
0x151e   :  { %2564 = vadd.xlane.f32.xlu1 %v2563_v24  ;;  %v2560_v25 = vsel %vm246_vm0, %v2556_v33, 0.0 }
0x151f   :  { %2561 = vadd.xlane.f32.xlu0 %v2560_v25 }
0x15ab   :  { %v2565_v26 = vpop.xlane.xlu1 %2564 }
0x15ac   :  { %v2567_v27 = vmul.f32 0.03125, %v2565_v26  ;;  %v2562_v28 = vpop.xlane.xlu0 %2561 }
0x15ad   :  { %v2566_v29 = vmul.f32 0.03125, %v2562_v28 }
0x15ae   :  { %v2569_v30 = vsub.f32 %v2557_v35, %v2567_v27 }
0x15af   :  { %v2568_v55 = vsub.f32 %v2556_v33, %v2566_v29 }
0x15b0   :  { %v2571_v54 = vmul.f32 %v2569_v30, %v2569_v30 }
0x15b1   :  { %v2570_v31 = vmul.f32 %v2568_v55, %v2568_v55 }
0x15b2   :  { %v2575_v32 = vsel %vm246_vm0, %v2571_v54, 0.0 }
0x15b3   :  { %2576 = vadd.xlane.f32.xlu1 %v2575_v32  ;;  %v2572_v0 = vsel %vm246_vm0, %v2570_v31, 0.0 }
0x15b4   :  { %2573 = vadd.xlane.f32.xlu0 %v2572_v0 }
0x1640   :  { %v2577_v34 = vpop.xlane.xlu1 %2576 }
0x1641   :  { %v2579_v37 = vmul.f32 0.03125, %v2577_v34  ;;  %v2574_v38 = vpop.xlane.xlu0 %2573 }
0x1642   :  { %v2578_v39 = vmul.f32 0.03125, %v2574_v38 }
0x1643   :  { %v2581_v40 = vadd.f32 1e-12, %v2579_v37 }
0x1644   :  { %v2580_v42 = vadd.f32 1e-12, %v2578_v39 }
0x1645   :  { %3117 = vrsqrt.f32 %v2581_v40 }
0x1646   :  { %3119 = vrsqrt.f32 %v2580_v42 }
0x164f   :  { %v3118_v41 = vpop.eup %3117 }
0x1650   :  { %v3120_v44 = vpop.eup %3119  ;;  %v2585_v45 = vmul.f32 %v3118_v41, %v2569_v30 }
0x1651   :  { %v2584_v46 = vmul.f32 %v3120_v44, %v2568_v55 }
0x1652   :  { %v2593_v48 = vmul.f32 %v2683_v43, %v2585_v45 }
0x1653   :  { %v2592_v49 = vmul.f32 %v2683_v43, %v2584_v46 }
0x1654   :  { %v2601_v50 = vadd.f32 %v2684_v47, %v2593_v48 }
0x1655   :  { %v2600_v51 = vadd.f32 %v2684_v47, %v2592_v49 }
0x1656   :  { %2603 = vst.msk [vmem:[#allocation23 + $0x8] sm:$0xff] %vm246_vm0, %v2601_v50 }
0x1657   :  { %2602 = vst.msk [vmem:[#allocation23] sm:$0xff] %vm246_vm0, %v2600_v51 }
0x1658   :  { %3418 = shalt.err (!%p3415_p10)
}
0x1659   :  { %s4213_s22 = sld [smem:[#allocation45_spill]] }
0x165f   :  { %s3419_s29 = scalar_lea.hbm %s4213_s22, 256 }
0x1660   :  { %p3420_p11 = scmp.ne.s32.totalorder %s4213_s22, %s3419_s29  ;;  %p3423_p12 = scmp.lt.u32.totalorder %s3419_s29, %s4213_s22 }
0x1662   :  { %p3425_p13 = pnand %p3423_p12, %p3420_p11 }
0x1664   :  { %3428 = shalt.err (!%p3425_p13)
}
0x1665   :  { %2615 = dma.vmem_to_hbm [thread:$0]  %s2610_s9, 256, %s4213_s22, [#allocation4], %s3452_s15, %s3452_s15, %s3453_s28  }
0x1666   :  { %3443 = dma.done.wait [#allocation4], 256  }
0x1667   :  { %3444 = vsyncadd [#allocation4], 4294967040 }
0x1668   :  { %2619 = vsyncpa [#allocation3], 1 }
0x1669   :  { %2620 = vsyncpa [#allocation6], 1 }
0x166a   :  { %2621 = vsyncpa [#allocation9], 1 }
0x166b   :  { %2622 = vsyncpa [#allocation12], 1 }
0x166c   :  { %2623 = vsyncpa [#allocation15], 1 }
0x166d   :  { %2624 = vsyncpa [#allocation18], 1 }
0x166e   :  { %2625 = vsyncpa [#allocation21], 1 }
0x166f   :  { %2626 = vsyncpa [#allocation4], 1 }

</bundles_post_ra>
